<compile_context>
chip_gen: v5e
topology: v5e:2x2
jax: 0.10.0
libtpu: 0.0.40
codegen_flags: <defaults>
</compile_context>

<pallas_src>
import math

import numpy as np
import jax
import jax.numpy as jnp
from jax.experimental import pallas as pl
from jax.experimental.pallas import tpu as pltpu

_BN_EPS = 1e-5  # nn.BatchNorm2d default
_PARALLEL = pltpu.CompilerParams(dimension_semantics=("parallel",))


# ----------------------------------------------------------------------------
# Pallas kernels
# ----------------------------------------------------------------------------
def _pool_kernel(x_ref, aw8_ref, ah8_ref, aw32_ref, ah32_ref, p8_ref, p32_ref):
    """Separable avg-pool of one (H, W) plane to (H/8, W/8) and (H/32, W/32)."""
    xb = x_ref[0]                                                       # (H, W)
    t8 = jnp.dot(xb, aw8_ref[...], preferred_element_type=jnp.float32)  # (H, w8)
    p8_ref[0] = jnp.dot(ah8_ref[...], t8, preferred_element_type=jnp.float32)
    t32 = jnp.dot(xb, aw32_ref[...], preferred_element_type=jnp.float32)
    p32_ref[0] = jnp.dot(ah32_ref[...], t32, preferred_element_type=jnp.float32)


def _head_kernel(p32_ref, p8_ref, wc4_ref, wc2_ref, wh_ref, bh_ref,
                 wl1_ref, bl1_ref, wl2_ref, bl2_ref, w1_ref, w2_ref, bf_ref,
                 t_ref, u_ref):
    """Fused channels-last head for one batch element.

    Produces the two 2-channel maps whose (separable) bilinear upsamples sum to
    the final logits:  T = gated_x_t1 @ W1  (at H/32 res),
                       U = c2 @ W2 + b_fused (at H/8 res).
    """
    f32 = jnp.float32
    bf16 = jnp.bfloat16

    # backbone stand-in 1x1 projection, 3 -> 192 (channels-last matmul)
    c4 = jnp.dot(p32_ref[0].astype(bf16), wc4_ref[...],
                 preferred_element_type=f32)                            # (S32, 192)
    # _conv_head: 192 -> 96, BN folded into weight, ReLU6
    out = jnp.dot(c4.astype(bf16), wh_ref[...],
                  preferred_element_type=f32) + bh_ref[...]             # (S32, 96)
    out = jnp.clip(out, 0.0, 6.0)
    # r_aspp.layer1: 96 -> 128, BN+bias folded, ReLU6
    xt1 = jnp.dot(out.astype(bf16), wl1_ref[...],
                  preferred_element_type=f32) + bl1_ref[...]            # (S32, 128)
    xt1 = jnp.clip(xt1, 0.0, 6.0)
    # AdaptiveAvgPool2d(1) as a ones-row matmul, then layer2 FC + hardsigmoid
    n = out.shape[0]
    pooled = jnp.dot(jnp.full((1, n), 1.0 / n, f32), out,
                     preferred_element_type=f32)                        # (1, 96)
    gate = jnp.dot(pooled.astype(bf16), wl2_ref[...],
                   preferred_element_type=f32) + bl2_ref[...]           # (1, 128)
    gate = jnp.clip(gate + 3.0, 0.0, 6.0) * (1.0 / 6.0)
    # gate * x_t1 (bilinear upsample of a 1x1 map == per-channel broadcast)
    gated = xt1 * gate                                                  # (S32, 128)
    # collapsed linear tail: (out_conv1 ; last_conv[:, :19]) on the gated path
    t_ref[0] = jnp.dot(gated, w1_ref[...], preferred_element_type=f32)  # (S32, 2)
    # backbone stand-in 3 -> 40, then (out_conv2 ; last_conv[:, 19:]) + fused bias
    c2 = jnp.dot(p8_ref[0].astype(bf16), wc2_ref[...],
                 preferred_element_type=f32)                            # (S8, 40)
    u_ref[0] = jnp.dot(c2, w2_ref[...],
                       preferred_element_type=f32) + bf_ref[...]        # (S8, 2)


def _resize_sum_kernel(t_ref, u_ref, mwc_ref, mhc_ref, mwf_ref, mhf_ref, o_ref):
    """mask_plane = Mh_comb @ T @ Mw_comb.T + Mh_fin @ U @ Mw_fin.T (separable)."""
    f32 = jnp.float32
    a = jnp.dot(t_ref[0], mwc_ref[...], preferred_element_type=f32)     # (h32, W)
    a = jnp.dot(mhc_ref[...], a, preferred_element_type=f32)            # (H, W)
    b = jnp.dot(u_ref[0], mwf_ref[...], preferred_element_type=f32)     # (h8, W)
    b = jnp.dot(mhf_ref[...], b, preferred_element_type=f32)            # (H, W)
    o_ref[0] = a + b


# ----------------------------------------------------------------------------
# Host-built resize matrices (exact PyTorch F.interpolate / AdaptiveAvgPool)
# ----------------------------------------------------------------------------
def bilinear_matrix(out_size, in_size, align_corners):
    M = np.zeros((out_size, in_size), dtype=np.float32)
    for o in range(out_size):
        if align_corners:
            src = o * (in_size - 1) / (out_size - 1) if out_size > 1 else 0.0
        else:
            src = (o + 0.5) * in_size / out_size - 0.5
            src = max(src, 0.0)
        i0 = min(int(np.floor(src)), in_size - 1)
        i1 = min(i0 + 1, in_size - 1)
        w1 = src - i0
        M[o, i0] += 1.0 - w1
        M[o, i1] += w1
    return M


def avgpool_matrix(in_size, out_size):
    # TODO(synk): assumes in_size % out_size == 0 (matches stride-pool semantics).
    k = in_size // out_size
    M = np.zeros((out_size, in_size), dtype=np.float32)
    for o in range(out_size):
        M[o, o * k:(o + 1) * k] = 1.0 / k
    return M


# ----------------------------------------------------------------------------
# Deterministic parameter init (shapes implied by MalignancyDetector.__init__)
# ----------------------------------------------------------------------------
def init_params(key):
    ks = jax.random.split(key, 13)

    def kaiming(k, cout, cin):  # kaiming_normal_, fan_in, relu gain
        return jnp.sqrt(2.0 / cin) * jax.random.normal(k, (cout, cin), jnp.float32)

    def conv_bias(k, cout, cin):  # PyTorch default conv bias init
        bound = 1.0 / math.sqrt(cin)
        return jax.random.uniform(k, (cout,), jnp.float32, -bound, bound)

    def bn(c):  # gamma=1, beta=0, running_mean=0, running_var=1 (inference)
        scale = jnp.full((c,), 1.0 / math.sqrt(1.0 + _BN_EPS), jnp.float32)
        shift = jnp.zeros((c,), jnp.float32)
        return scale, shift

    p = {}
    p["w_bb_c2"] = kaiming(ks[0], 40, 3)      # stand-in backbone -> c2 (40 ch)
    p["w_bb_c4"] = kaiming(ks[1], 192, 3)     # stand-in backbone -> c4 (192 ch)
    p["w_head"] = kaiming(ks[2], 96, 192)     # _conv_head Conv2d(192,96,1,bias=False)
    p["bn_head"] = bn(96)
    p["w_l1"] = kaiming(ks[3], 128, 96)       # r_aspp.layer1 Conv2d(96,128,1)
    p["b_l1"] = conv_bias(ks[4], 128, 96)
    p["bn_l1"] = bn(128)
    p["w_l2"] = kaiming(ks[5], 128, 96)       # r_aspp.layer2 Conv2d(96,128,1)
    p["b_l2"] = conv_bias(ks[6], 128, 96)
    p["w_oc1"] = kaiming(ks[7], 19, 128)      # r_aspp.out_conv1 Conv2d(128,19,1)
    p["b_oc1"] = conv_bias(ks[8], 19, 128)
    p["w_oc2"] = kaiming(ks[9], 19, 40)       # r_aspp.out_conv2 Conv2d(40,19,1)
    p["b_oc2"] = conv_bias(ks[10], 19, 40)
    p["w_last"] = kaiming(ks[11], 2, 38)      # last_conv Conv2d(38,2,1)
    p["b_last"] = conv_bias(ks[12], 2, 38)
    return p


# ----------------------------------------------------------------------------
# Forward
# ----------------------------------------------------------------------------
def malignancy_detector_forward(params, x):
    B, Cin, H, W = x.shape
    assert H % 32 == 0 and W % 32 == 0
    h8, w8, h32, w32 = H // 8, W // 8, H // 32, W // 32
    s8, s32 = h8 * w8, h32 * w32
    f32, bf16 = jnp.float32, jnp.bfloat16

    # ---- fold BN (inference) + biases + the linear tail into the weights ----
    s_head, t_head = params["bn_head"]
    wh = (params["w_head"] * s_head[:, None]).T.astype(bf16)          # (192, 96)
    bh = t_head.reshape(1, 96)                                        # no conv bias
    s_l1, t_l1 = params["bn_l1"]
    wl1 = (params["w_l1"] * s_l1[:, None]).T.astype(bf16)             # (96, 128)
    bl1 = (params["b_l1"] * s_l1 + t_l1).reshape(1, 128)
    wl2 = params["w_l2"].T.astype(bf16)                               # (96, 128)
    bl2 = params["b_l2"].reshape(1, 128)
    # out_conv1 / out_conv2 + concat + last_conv collapse to two (C,2) matmuls
    wlast1, wlast2 = params["w_last"][:, :19], params["w_last"][:, 19:]
    w1 = (wlast1 @ params["w_oc1"]).T.astype(f32)                     # (128, 2)
    w2 = (wlast2 @ params["w_oc2"]).T.astype(f32)                     # (40, 2)
    bf = (wlast1 @ params["b_oc1"] + wlast2 @ params["b_oc2"]
          + params["b_last"]).reshape(1, 2)
    wc2 = params["w_bb_c2"].T.astype(bf16)                            # (3, 40)
    wc4 = params["w_bb_c4"].T.astype(bf16)                            # (3, 192)

    # ---- resize matrices (tiny, host-built); mid+final bilinear composed ----
    ah8 = jnp.asarray(avgpool_matrix(H, h8))
    aw8t = jnp.asarray(avgpool_matrix(W, w8).T)
    ah32 = jnp.asarray(avgpool_matrix(H, h32))
    aw32t = jnp.asarray(avgpool_matrix(W, w32).T)
    mh_mid = bilinear_matrix(h8, h32, False)
    mw_mid = bilinear_matrix(w8, w32, False)
    mh_fin = bilinear_matrix(H, h8, True)
    mw_fin = bilinear_matrix(W, w8, True)
    mhc = jnp.asarray(mh_fin @ mh_mid)                                # (H, h32)
    mwct = jnp.asarray((mw_fin @ mw_mid).T)                           # (w32, W)
    mhf = jnp.asarray(mh_fin)                                         # (H, h8)
    mwft = jnp.asarray(mw_fin.T)                                      # (w8, W)

    def full2(shape):
        return pl.BlockSpec(shape, lambda n: (0, 0))

    # TODO(synk): EfficientNet-lite1 backbone (EffNet.from_name) is an external
    # dependency not defined in the module; replaced by a deterministic stand-in
    # (separable average-pool + 1x1 projection) producing feature maps with the
    # correct shapes: c2 = (B, 40, H/8, W/8), c4 = (B, 192, H/32, W/32).
    x_planes = x.reshape(B * Cin, H, W).astype(f32)
    p8, p32 = pl.pallas_call(
        _pool_kernel,
        out_shape=(jax.ShapeDtypeStruct((B * Cin, h8, w8), f32),
                   jax.ShapeDtypeStruct((B * Cin, h32, w32), f32)),
        grid=(B * Cin,),
        in_specs=[pl.BlockSpec((1, H, W), lambda n: (n, 0, 0)),
                  full2((W, w8)), full2((h8, H)),
                  full2((W, w32)), full2((h32, H))],
        out_specs=(pl.BlockSpec((1, h8, w8), lambda n: (n, 0, 0)),
                   pl.BlockSpec((1, h32, w32), lambda n: (n, 0, 0))),
        compiler_params=_PARALLEL,
    )(x_planes, aw8t, ah8, aw32t, ah32)

    # tiny layout fix-ups (channels-last for the conv chain)
    p8_cl = p8.reshape(B, Cin, s8).transpose(0, 2, 1)                 # (B, S8, 3)
    p32_cl = p32.reshape(B, Cin, s32).transpose(0, 2, 1)              # (B, S32, 3)

    t_cl, u_cl = pl.pallas_call(
        _head_kernel,
        out_shape=(jax.ShapeDtypeStruct((B, s32, 2), f32),
                   jax.ShapeDtypeStruct((B, s8, 2), f32)),
        grid=(B,),
        in_specs=[pl.BlockSpec((1, s32, Cin), lambda b: (b, 0, 0)),
                  pl.BlockSpec((1, s8, Cin), lambda b: (b, 0, 0)),
                  full2((Cin, 192)), full2((Cin, 40)),
                  full2((192, 96)), full2((1, 96)),
                  full2((96, 128)), full2((1, 128)),
                  full2((96, 128)), full2((1, 128)),
                  full2((128, 2)), full2((40, 2)), full2((1, 2))],
        out_specs=(pl.BlockSpec((1, s32, 2), lambda b: (b, 0, 0)),
                   pl.BlockSpec((1, s8, 2), lambda b: (b, 0, 0))),
        compiler_params=_PARALLEL,
    )(p32_cl, p8_cl, wc4, wc2, wh, bh, wl1, bl1, wl2, bl2, w1, w2, bf)

    # spatial-last planes for the separable upsample (tiny tensors)
    t_sp = t_cl.reshape(B, h32, w32, 2).transpose(0, 3, 1, 2).reshape(B * 2, h32, w32)
    u_sp = u_cl.reshape(B, h8, w8, 2).transpose(0, 3, 1, 2).reshape(B * 2, h8, w8)

    mask = pl.pallas_call(
        _resize_sum_kernel,
        out_shape=jax.ShapeDtypeStruct((B * 2, H, W), f32),
        grid=(B * 2,),
        in_specs=[pl.BlockSpec((1, h32, w32), lambda n: (n, 0, 0)),
                  pl.BlockSpec((1, h8, w8), lambda n: (n, 0, 0)),
                  full2((w32, W)), full2((H, h32)),
                  full2((w8, W)), full2((H, h8))],
        out_specs=pl.BlockSpec((1, H, W), lambda n: (n, 0, 0)),
        compiler_params=_PARALLEL,
    )(t_sp, u_sp, mwct, mhc, mwft, mhf)

    return mask.reshape(B, 2, H, W)


if __name__ == "__main__":
    key = jax.random.PRNGKey(0)
    pkey, xkey = jax.random.split(key)
    params = init_params(pkey)
    x = jax.random.normal(xkey, (2, 3, 64, 64), jnp.float32)  # NCHW RGB input

    fwd = jax.jit(malignancy_detector_forward)
    mask = jax.block_until_ready(fwd(params, x))

    assert mask.shape == (2, 2, 64, 64), mask.shape
    assert bool(jnp.all(jnp.isfinite(mask)))
    print("KERNEL_OK")
</pallas_src>

<mosaic_0001>
module attributes {stable_mosaic.version = 11 : i64} {
  func.func @_pool_kernel(%arg0: i32, %arg1: memref<1x64x64xf32, #tpu.memory_space<vmem>>, %arg2: memref<64x8xf32, #tpu.memory_space<vmem>>, %arg3: memref<8x64xf32, #tpu.memory_space<vmem>>, %arg4: memref<64x2xf32, #tpu.memory_space<vmem>>, %arg5: memref<2x64xf32, #tpu.memory_space<vmem>>, %arg6: memref<1x8x8xf32, #tpu.memory_space<vmem>>, %arg7: memref<1x2x2xf32, #tpu.memory_space<vmem>>) attributes {dimension_semantics = [#tpu.dimension_semantics<parallel>], iteration_bounds = array<i64: 6>, scalar_prefetch = 0 : i64, scratch_operands = 0 : i64, tpu.core_type = #tpu.core_type<tc>, window_params = [{transform_indices = @transform_0, window_bounds = array<i64: 1, 64, 64>}, {pipeline_mode = #tpu.pipeline_mode<synchronous>, transform_indices = @transform_1, window_bounds = array<i64: 64, 8>}, {pipeline_mode = #tpu.pipeline_mode<synchronous>, transform_indices = @transform_2, window_bounds = array<i64: 8, 64>}, {pipeline_mode = #tpu.pipeline_mode<synchronous>, transform_indices = @transform_3, window_bounds = array<i64: 64, 2>}, {pipeline_mode = #tpu.pipeline_mode<synchronous>, transform_indices = @transform_4, window_bounds = array<i64: 2, 64>}, {transform_indices = @transform_5, window_bounds = array<i64: 1, 8, 8>}, {transform_indices = @transform_6, window_bounds = array<i64: 1, 2, 2>}]} {
    %c0 = arith.constant 0 : index
    %c0_0 = arith.constant 0 : index
    %c0_1 = arith.constant 0 : index
    %0 = vector.load %arg1[%c0, %c0_0, %c0_1] : memref<1x64x64xf32, #tpu.memory_space<vmem>>, vector<1x64x64xf32>
    %1 = vector.shape_cast %0 : vector<1x64x64xf32> to vector<64x64xf32>
    %c0_2 = arith.constant 0 : index
    %c0_3 = arith.constant 0 : index
    %2 = vector.load %arg2[%c0_2, %c0_3] : memref<64x8xf32, #tpu.memory_space<vmem>>, vector<64x8xf32>
    %cst = arith.constant dense<0.000000e+00> : vector<64x8xf32>
    %3 = tpu.matmul %1, %2, %cst {dimension_numbers = #tpu.dot_dimension_numbers<[1], [0], [0], [1], [0, 0, 1, 1], [], []>} : vector<64x64xf32>, vector<64x8xf32>, vector<64x8xf32> -> vector<64x8xf32>
    %c0_4 = arith.constant 0 : index
    %c0_5 = arith.constant 0 : index
    %4 = vector.load %arg3[%c0_4, %c0_5] : memref<8x64xf32, #tpu.memory_space<vmem>>, vector<8x64xf32>
    %cst_6 = arith.constant dense<0.000000e+00> : vector<8x8xf32>
    %5 = tpu.matmul %4, %3, %cst_6 {dimension_numbers = #tpu.dot_dimension_numbers<[1], [0], [0], [1], [0, 0, 1, 1], [], []>} : vector<8x64xf32>, vector<64x8xf32>, vector<8x8xf32> -> vector<8x8xf32>
    %c0_7 = arith.constant 0 : index
    %c0_8 = arith.constant 0 : index
    %c0_9 = arith.constant 0 : index
    %6 = vector.load %arg6[%c0_7, %c0_8, %c0_9] : memref<1x8x8xf32, #tpu.memory_space<vmem>>, vector<1x8x8xf32>
    %7 = vector.shape_cast %6 : vector<1x8x8xf32> to vector<8x8xf32>
    %8 = vector.shape_cast %5 : vector<8x8xf32> to vector<1x8x8xf32>
    tpu.vector_store %arg6[%c0_7, %c0_8, %c0_9], %8 {strides = array<i32>} : memref<1x8x8xf32, #tpu.memory_space<vmem>>, vector<1x8x8xf32>,
    %c0_10 = arith.constant 0 : index
    %c0_11 = arith.constant 0 : index
    %9 = vector.load %arg4[%c0_10, %c0_11] : memref<64x2xf32, #tpu.memory_space<vmem>>, vector<64x2xf32>
    %cst_12 = arith.constant dense<0.000000e+00> : vector<64x2xf32>
    %10 = tpu.matmul %1, %9, %cst_12 {dimension_numbers = #tpu.dot_dimension_numbers<[1], [0], [0], [1], [0, 0, 1, 1], [], []>} : vector<64x64xf32>, vector<64x2xf32>, vector<64x2xf32> -> vector<64x2xf32>
    %c0_13 = arith.constant 0 : index
    %c0_14 = arith.constant 0 : index
    %11 = vector.load %arg5[%c0_13, %c0_14] : memref<2x64xf32, #tpu.memory_space<vmem>>, vector<2x64xf32>
    %cst_15 = arith.constant dense<0.000000e+00> : vector<2x2xf32>
    %12 = tpu.matmul %11, %10, %cst_15 {dimension_numbers = #tpu.dot_dimension_numbers<[1], [0], [0], [1], [0, 0, 1, 1], [], []>} : vector<2x64xf32>, vector<64x2xf32>, vector<2x2xf32> -> vector<2x2xf32>
    %c0_16 = arith.constant 0 : index
    %c0_17 = arith.constant 0 : index
    %c0_18 = arith.constant 0 : index
    %13 = vector.load %arg7[%c0_16, %c0_17, %c0_18] : memref<1x2x2xf32, #tpu.memory_space<vmem>>, vector<1x2x2xf32>
    %14 = vector.shape_cast %13 : vector<1x2x2xf32> to vector<2x2xf32>
    %15 = vector.shape_cast %12 : vector<2x2xf32> to vector<1x2x2xf32>
    tpu.vector_store %arg7[%c0_16, %c0_17, %c0_18], %15 {strides = array<i32>} : memref<1x2x2xf32, #tpu.memory_space<vmem>>, vector<1x2x2xf32>,
    return
  }
  func.func @transform_0(%arg0: i32) -> (i32, i32, i32) {
    %c0_i32 = arith.constant 0 : i32
    %c0_i32_0 = arith.constant 0 : i32
    %c0_i32_1 = arith.constant 0 : i32
    return %arg0, %c0_i32, %c0_i32_0 : i32, i32, i32
  }
  func.func @transform_1(%arg0: i32) -> (i32, i32) {
    %c0_i32 = arith.constant 0 : i32
    %c0_i32_0 = arith.constant 0 : i32
    %c0_i32_1 = arith.constant 0 : i32
    return %c0_i32, %c0_i32_0 : i32, i32
  }
  func.func @transform_2(%arg0: i32) -> (i32, i32) {
    %c0_i32 = arith.constant 0 : i32
    %c0_i32_0 = arith.constant 0 : i32
    %c0_i32_1 = arith.constant 0 : i32
    return %c0_i32, %c0_i32_0 : i32, i32
  }
  func.func @transform_3(%arg0: i32) -> (i32, i32) {
    %c0_i32 = arith.constant 0 : i32
    %c0_i32_0 = arith.constant 0 : i32
    %c0_i32_1 = arith.constant 0 : i32
    return %c0_i32, %c0_i32_0 : i32, i32
  }
  func.func @transform_4(%arg0: i32) -> (i32, i32) {
    %c0_i32 = arith.constant 0 : i32
    %c0_i32_0 = arith.constant 0 : i32
    %c0_i32_1 = arith.constant 0 : i32
    return %c0_i32, %c0_i32_0 : i32, i32
  }
  func.func @transform_5(%arg0: i32) -> (i32, i32, i32) {
    %c0_i32 = arith.constant 0 : i32
    %c0_i32_0 = arith.constant 0 : i32
    %c0_i32_1 = arith.constant 0 : i32
    return %arg0, %c0_i32, %c0_i32_0 : i32, i32, i32
  }
  func.func @transform_6(%arg0: i32) -> (i32, i32, i32) {
    %c0_i32 = arith.constant 0 : i32
    %c0_i32_0 = arith.constant 0 : i32
    %c0_i32_1 = arith.constant 0 : i32
    return %arg0, %c0_i32, %c0_i32_0 : i32, i32, i32
  }
}

module attributes {stable_mosaic.version = 11 : i64} {
  func.func @_head_kernel(%arg0: i32, %arg1: memref<1x4x3xf32, #tpu.memory_space<vmem>>, %arg2: memref<1x64x3xf32, #tpu.memory_space<vmem>>, %arg3: memref<3x192xbf16, #tpu.memory_space<vmem>>, %arg4: memref<3x40xbf16, #tpu.memory_space<vmem>>, %arg5: memref<192x96xbf16, #tpu.memory_space<vmem>>, %arg6: memref<1x96xf32, #tpu.memory_space<vmem>>, %arg7: memref<96x128xbf16, #tpu.memory_space<vmem>>, %arg8: memref<1x128xf32, #tpu.memory_space<vmem>>, %arg9: memref<96x128xbf16, #tpu.memory_space<vmem>>, %arg10: memref<1x128xf32, #tpu.memory_space<vmem>>, %arg11: memref<128x2xf32, #tpu.memory_space<vmem>>, %arg12: memref<40x2xf32, #tpu.memory_space<vmem>>, %arg13: memref<1x2xf32, #tpu.memory_space<vmem>>, %arg14: memref<1x4x2xf32, #tpu.memory_space<vmem>>, %arg15: memref<1x64x2xf32, #tpu.memory_space<vmem>>) attributes {dimension_semantics = [#tpu.dimension_semantics<parallel>], iteration_bounds = array<i64: 2>, scalar_prefetch = 0 : i64, scratch_operands = 0 : i64, tpu.core_type = #tpu.core_type<tc>, window_params = [{transform_indices = @transform_0, window_bounds = array<i64: 1, 4, 3>}, {transform_indices = @transform_1, window_bounds = array<i64: 1, 64, 3>}, {pipeline_mode = #tpu.pipeline_mode<synchronous>, transform_indices = @transform_2, window_bounds = array<i64: 3, 192>}, {pipeline_mode = #tpu.pipeline_mode<synchronous>, transform_indices = @transform_3, window_bounds = array<i64: 3, 40>}, {pipeline_mode = #tpu.pipeline_mode<synchronous>, transform_indices = @transform_4, window_bounds = array<i64: 192, 96>}, {pipeline_mode = #tpu.pipeline_mode<synchronous>, transform_indices = @transform_5, window_bounds = array<i64: 1, 96>}, {pipeline_mode = #tpu.pipeline_mode<synchronous>, transform_indices = @transform_6, window_bounds = array<i64: 96, 128>}, {pipeline_mode = #tpu.pipeline_mode<synchronous>, transform_indices = @transform_7, window_bounds = array<i64: 1, 128>}, {pipeline_mode = #tpu.pipeline_mode<synchronous>, transform_indices = @transform_8, window_bounds = array<i64: 96, 128>}, {pipeline_mode = #tpu.pipeline_mode<synchronous>, transform_indices = @transform_9, window_bounds = array<i64: 1, 128>}, {pipeline_mode = #tpu.pipeline_mode<synchronous>, transform_indices = @transform_10, window_bounds = array<i64: 128, 2>}, {pipeline_mode = #tpu.pipeline_mode<synchronous>, transform_indices = @transform_11, window_bounds = array<i64: 40, 2>}, {pipeline_mode = #tpu.pipeline_mode<synchronous>, transform_indices = @transform_12, window_bounds = array<i64: 1, 2>}, {transform_indices = @transform_13, window_bounds = array<i64: 1, 4, 2>}, {transform_indices = @transform_14, window_bounds = array<i64: 1, 64, 2>}]} {
    %c0 = arith.constant 0 : index
    %c0_0 = arith.constant 0 : index
    %c0_1 = arith.constant 0 : index
    %0 = vector.load %arg1[%c0, %c0_0, %c0_1] : memref<1x4x3xf32, #tpu.memory_space<vmem>>, vector<1x4x3xf32>
    %1 = vector.shape_cast %0 : vector<1x4x3xf32> to vector<4x3xf32>
    %2 = arith.truncf %1 : vector<4x3xf32> to vector<4x3xbf16>
    %c0_2 = arith.constant 0 : index
    %c0_3 = arith.constant 0 : index
    %3 = vector.load %arg3[%c0_2, %c0_3] : memref<3x192xbf16, #tpu.memory_space<vmem>>, vector<3x192xbf16>
    %cst = arith.constant dense<0.000000e+00> : vector<4x192xf32>
    %4 = tpu.matmul %2, %3, %cst {dimension_numbers = #tpu.dot_dimension_numbers<[1], [0], [0], [1], [0, 0, 1, 1], [], []>} : vector<4x3xbf16>, vector<3x192xbf16>, vector<4x192xf32> -> vector<4x192xf32>
    %5 = arith.truncf %4 : vector<4x192xf32> to vector<4x192xbf16>
    %c0_4 = arith.constant 0 : index
    %c0_5 = arith.constant 0 : index
    %6 = vector.load %arg5[%c0_4, %c0_5] : memref<192x96xbf16, #tpu.memory_space<vmem>>, vector<192x96xbf16>
    %cst_6 = arith.constant dense<0.000000e+00> : vector<4x96xf32>
    %7 = tpu.matmul %5, %6, %cst_6 {dimension_numbers = #tpu.dot_dimension_numbers<[1], [0], [0], [1], [0, 0, 1, 1], [], []>} : vector<4x192xbf16>, vector<192x96xbf16>, vector<4x96xf32> -> vector<4x96xf32>
    %c0_7 = arith.constant 0 : index
    %c0_8 = arith.constant 0 : index
    %8 = vector.load %arg6[%c0_7, %c0_8] : memref<1x96xf32, #tpu.memory_space<vmem>>, vector<1x96xf32>
    %9 = vector.broadcast %8 : vector<1x96xf32> to vector<4x96xf32>
    %10 = arith.addf %7, %9 : vector<4x96xf32>
    %cst_9 = arith.constant 0.000000e+00 : f32
    %cst_10 = arith.constant 6.000000e+00 : f32
    %11 = vector.broadcast %cst_9 : f32 to vector<4x96xf32>
    %12 = arith.maximumf %11, %10 : vector<4x96xf32>
    %13 = vector.broadcast %cst_10 : f32 to vector<4x96xf32>
    %14 = arith.minimumf %13, %12 : vector<4x96xf32>
    %15 = arith.truncf %14 : vector<4x96xf32> to vector<4x96xbf16>
    %c0_11 = arith.constant 0 : index
    %c0_12 = arith.constant 0 : index
    %16 = vector.load %arg7[%c0_11, %c0_12] : memref<96x128xbf16, #tpu.memory_space<vmem>>, vector<96x128xbf16>
    %cst_13 = arith.constant dense<0.000000e+00> : vector<4x128xf32>
    %17 = tpu.matmul %15, %16, %cst_13 {dimension_numbers = #tpu.dot_dimension_numbers<[1], [0], [0], [1], [0, 0, 1, 1], [], []>} : vector<4x96xbf16>, vector<96x128xbf16>, vector<4x128xf32> -> vector<4x128xf32>
    %c0_14 = arith.constant 0 : index
    %c0_15 = arith.constant 0 : index
    %18 = vector.load %arg8[%c0_14, %c0_15] : memref<1x128xf32, #tpu.memory_space<vmem>>, vector<1x128xf32>
    %19 = vector.broadcast %18 : vector<1x128xf32> to vector<4x128xf32>
    %20 = arith.addf %17, %19 : vector<4x128xf32>
    %cst_16 = arith.constant 0.000000e+00 : f32
    %cst_17 = arith.constant 6.000000e+00 : f32
    %21 = vector.broadcast %cst_16 : f32 to vector<4x128xf32>
    %22 = arith.maximumf %21, %20 : vector<4x128xf32>
    %23 = vector.broadcast %cst_17 : f32 to vector<4x128xf32>
    %24 = arith.minimumf %23, %22 : vector<4x128xf32>
    %cst_18 = arith.constant 2.500000e-01 : f32
    %25 = vector.broadcast %cst_18 : f32 to vector<1x4xf32>
    %cst_19 = arith.constant dense<0.000000e+00> : vector<1x96xf32>
    %26 = tpu.matmul %25, %14, %cst_19 {dimension_numbers = #tpu.dot_dimension_numbers<[1], [0], [0], [1], [0, 0, 1, 1], [], []>} : vector<1x4xf32>, vector<4x96xf32>, vector<1x96xf32> -> vector<1x96xf32>
    %27 = arith.truncf %26 : vector<1x96xf32> to vector<1x96xbf16>
    %c0_20 = arith.constant 0 : index
    %c0_21 = arith.constant 0 : index
    %28 = vector.load %arg9[%c0_20, %c0_21] : memref<96x128xbf16, #tpu.memory_space<vmem>>, vector<96x128xbf16>
    %cst_22 = arith.constant dense<0.000000e+00> : vector<1x128xf32>
    %29 = tpu.matmul %27, %28, %cst_22 {dimension_numbers = #tpu.dot_dimension_numbers<[1], [0], [0], [1], [0, 0, 1, 1], [], []>} : vector<1x96xbf16>, vector<96x128xbf16>, vector<1x128xf32> -> vector<1x128xf32>
    %c0_23 = arith.constant 0 : index
    %c0_24 = arith.constant 0 : index
    %30 = vector.load %arg10[%c0_23, %c0_24] : memref<1x128xf32, #tpu.memory_space<vmem>>, vector<1x128xf32>
    %31 = arith.addf %29, %30 : vector<1x128xf32>
    %cst_25 = arith.constant 3.000000e+00 : f32
    %32 = vector.broadcast %cst_25 : f32 to vector<1x128xf32>
    %33 = arith.addf %31, %32 : vector<1x128xf32>
    %cst_26 = arith.constant 0.000000e+00 : f32
    %cst_27 = arith.constant 6.000000e+00 : f32
    %34 = vector.broadcast %cst_26 : f32 to vector<1x128xf32>
    %35 = arith.maximumf %34, %33 : vector<1x128xf32>
    %36 = vector.broadcast %cst_27 : f32 to vector<1x128xf32>
    %37 = arith.minimumf %36, %35 : vector<1x128xf32>
    %cst_28 = arith.constant 0.166666672 : f32
    %38 = vector.broadcast %cst_28 : f32 to vector<1x128xf32>
    %39 = arith.mulf %37, %38 : vector<1x128xf32>
    %40 = vector.broadcast %39 : vector<1x128xf32> to vector<4x128xf32>
    %41 = arith.mulf %24, %40 : vector<4x128xf32>
    %c0_29 = arith.constant 0 : index
    %c0_30 = arith.constant 0 : index
    %42 = vector.load %arg11[%c0_29, %c0_30] : memref<128x2xf32, #tpu.memory_space<vmem>>, vector<128x2xf32>
    %cst_31 = arith.constant dense<0.000000e+00> : vector<4x2xf32>
    %43 = tpu.matmul %41, %42, %cst_31 {dimension_numbers = #tpu.dot_dimension_numbers<[1], [0], [0], [1], [0, 0, 1, 1], [], []>} : vector<4x128xf32>, vector<128x2xf32>, vector<4x2xf32> -> vector<4x2xf32>
    %c0_32 = arith.constant 0 : index
    %c0_33 = arith.constant 0 : index
    %c0_34 = arith.constant 0 : index
    %44 = vector.load %arg14[%c0_32, %c0_33, %c0_34] : memref<1x4x2xf32, #tpu.memory_space<vmem>>, vector<1x4x2xf32>
    %45 = vector.shape_cast %44 : vector<1x4x2xf32> to vector<4x2xf32>
    %46 = vector.shape_cast %43 : vector<4x2xf32> to vector<1x4x2xf32>
    tpu.vector_store %arg14[%c0_32, %c0_33, %c0_34], %46 {strides = array<i32>} : memref<1x4x2xf32, #tpu.memory_space<vmem>>, vector<1x4x2xf32>,
    %c0_35 = arith.constant 0 : index
    %c0_36 = arith.constant 0 : index
    %c0_37 = arith.constant 0 : index
    %47 = vector.load %arg2[%c0_35, %c0_36, %c0_37] : memref<1x64x3xf32, #tpu.memory_space<vmem>>, vector<1x64x3xf32>
    %48 = vector.shape_cast %47 : vector<1x64x3xf32> to vector<64x3xf32>
    %49 = arith.truncf %48 : vector<64x3xf32> to vector<64x3xbf16>
    %c0_38 = arith.constant 0 : index
    %c0_39 = arith.constant 0 : index
    %50 = vector.load %arg4[%c0_38, %c0_39] : memref<3x40xbf16, #tpu.memory_space<vmem>>, vector<3x40xbf16>
    %cst_40 = arith.constant dense<0.000000e+00> : vector<64x40xf32>
    %51 = tpu.matmul %49, %50, %cst_40 {dimension_numbers = #tpu.dot_dimension_numbers<[1], [0], [0], [1], [0, 0, 1, 1], [], []>} : vector<64x3xbf16>, vector<3x40xbf16>, vector<64x40xf32> -> vector<64x40xf32>
    %c0_41 = arith.constant 0 : index
    %c0_42 = arith.constant 0 : index
    %52 = vector.load %arg12[%c0_41, %c0_42] : memref<40x2xf32, #tpu.memory_space<vmem>>, vector<40x2xf32>
    %cst_43 = arith.constant dense<0.000000e+00> : vector<64x2xf32>
    %53 = tpu.matmul %51, %52, %cst_43 {dimension_numbers = #tpu.dot_dimension_numbers<[1], [0], [0], [1], [0, 0, 1, 1], [], []>} : vector<64x40xf32>, vector<40x2xf32>, vector<64x2xf32> -> vector<64x2xf32>
    %c0_44 = arith.constant 0 : index
    %c0_45 = arith.constant 0 : index
    %54 = vector.load %arg13[%c0_44, %c0_45] : memref<1x2xf32, #tpu.memory_space<vmem>>, vector<1x2xf32>
    %55 = vector.broadcast %54 : vector<1x2xf32> to vector<64x2xf32>
    %56 = arith.addf %53, %55 : vector<64x2xf32>
    %c0_46 = arith.constant 0 : index
    %c0_47 = arith.constant 0 : index
    %c0_48 = arith.constant 0 : index
    %57 = vector.load %arg15[%c0_46, %c0_47, %c0_48] : memref<1x64x2xf32, #tpu.memory_space<vmem>>, vector<1x64x2xf32>
    %58 = vector.shape_cast %57 : vector<1x64x2xf32> to vector<64x2xf32>
    %59 = vector.shape_cast %56 : vector<64x2xf32> to vector<1x64x2xf32>
    tpu.vector_store %arg15[%c0_46, %c0_47, %c0_48], %59 {strides = array<i32>} : memref<1x64x2xf32, #tpu.memory_space<vmem>>, vector<1x64x2xf32>,
    return
  }
  func.func @transform_0(%arg0: i32) -> (i32, i32, i32) {
    %c0_i32 = arith.constant 0 : i32
    %c0_i32_0 = arith.constant 0 : i32
    %c0_i32_1 = arith.constant 0 : i32
    return %arg0, %c0_i32, %c0_i32_0 : i32, i32, i32
  }
  func.func @transform_1(%arg0: i32) -> (i32, i32, i32) {
    %c0_i32 = arith.constant 0 : i32
    %c0_i32_0 = arith.constant 0 : i32
    %c0_i32_1 = arith.constant 0 : i32
    return %arg0, %c0_i32, %c0_i32_0 : i32, i32, i32
  }
  func.func @transform_2(%arg0: i32) -> (i32, i32) {
    %c0_i32 = arith.constant 0 : i32
    %c0_i32_0 = arith.constant 0 : i32
    %c0_i32_1 = arith.constant 0 : i32
    return %c0_i32, %c0_i32_0 : i32, i32
  }
  func.func @transform_3(%arg0: i32) -> (i32, i32) {
    %c0_i32 = arith.constant 0 : i32
    %c0_i32_0 = arith.constant 0 : i32
    %c0_i32_1 = arith.constant 0 : i32
    return %c0_i32, %c0_i32_0 : i32, i32
  }
  func.func @transform_4(%arg0: i32) -> (i32, i32) {
    %c0_i32 = arith.constant 0 : i32
    %c0_i32_0 = arith.constant 0 : i32
    %c0_i32_1 = arith.constant 0 : i32
    return %c0_i32, %c0_i32_0 : i32, i32
  }
  func.func @transform_5(%arg0: i32) -> (i32, i32) {
    %c0_i32 = arith.constant 0 : i32
    %c0_i32_0 = arith.constant 0 : i32
    %c0_i32_1 = arith.constant 0 : i32
    return %c0_i32, %c0_i32_0 : i32, i32
  }
  func.func @transform_6(%arg0: i32) -> (i32, i32) {
    %c0_i32 = arith.constant 0 : i32
    %c0_i32_0 = arith.constant 0 : i32
    %c0_i32_1 = arith.constant 0 : i32
    return %c0_i32, %c0_i32_0 : i32, i32
  }
  func.func @transform_7(%arg0: i32) -> (i32, i32) {
    %c0_i32 = arith.constant 0 : i32
    %c0_i32_0 = arith.constant 0 : i32
    %c0_i32_1 = arith.constant 0 : i32
    return %c0_i32, %c0_i32_0 : i32, i32
  }
  func.func @transform_8(%arg0: i32) -> (i32, i32) {
    %c0_i32 = arith.constant 0 : i32
    %c0_i32_0 = arith.constant 0 : i32
    %c0_i32_1 = arith.constant 0 : i32
    return %c0_i32, %c0_i32_0 : i32, i32
  }
  func.func @transform_9(%arg0: i32) -> (i32, i32) {
    %c0_i32 = arith.constant 0 : i32
    %c0_i32_0 = arith.constant 0 : i32
    %c0_i32_1 = arith.constant 0 : i32
    return %c0_i32, %c0_i32_0 : i32, i32
  }
  func.func @transform_10(%arg0: i32) -> (i32, i32) {
    %c0_i32 = arith.constant 0 : i32
    %c0_i32_0 = arith.constant 0 : i32
    %c0_i32_1 = arith.constant 0 : i32
    return %c0_i32, %c0_i32_0 : i32, i32
  }
  func.func @transform_11(%arg0: i32) -> (i32, i32) {
    %c0_i32 = arith.constant 0 : i32
    %c0_i32_0 = arith.constant 0 : i32
    %c0_i32_1 = arith.constant 0 : i32
    return %c0_i32, %c0_i32_0 : i32, i32
  }
  func.func @transform_12(%arg0: i32) -> (i32, i32) {
    %c0_i32 = arith.constant 0 : i32
    %c0_i32_0 = arith.constant 0 : i32
    %c0_i32_1 = arith.constant 0 : i32
    return %c0_i32, %c0_i32_0 : i32, i32
  }
  func.func @transform_13(%arg0: i32) -> (i32, i32, i32) {
    %c0_i32 = arith.constant 0 : i32
    %c0_i32_0 = arith.constant 0 : i32
    %c0_i32_1 = arith.constant 0 : i32
    return %arg0, %c0_i32, %c0_i32_0 : i32, i32, i32
  }
  func.func @transform_14(%arg0: i32) -> (i32, i32, i32) {
    %c0_i32 = arith.constant 0 : i32
    %c0_i32_0 = arith.constant 0 : i32
    %c0_i32_1 = arith.constant 0 : i32
    return %arg0, %c0_i32, %c0_i32_0 : i32, i32, i32
  }
}

module attributes {stable_mosaic.version = 11 : i64} {
  func.func @_resize_sum_kernel(%arg0: i32, %arg1: memref<1x2x2xf32, #tpu.memory_space<vmem>>, %arg2: memref<1x8x8xf32, #tpu.memory_space<vmem>>, %arg3: memref<2x64xf32, #tpu.memory_space<vmem>>, %arg4: memref<64x2xf32, #tpu.memory_space<vmem>>, %arg5: memref<8x64xf32, #tpu.memory_space<vmem>>, %arg6: memref<64x8xf32, #tpu.memory_space<vmem>>, %arg7: memref<1x64x64xf32, #tpu.memory_space<vmem>>) attributes {dimension_semantics = [#tpu.dimension_semantics<parallel>], iteration_bounds = array<i64: 4>, scalar_prefetch = 0 : i64, scratch_operands = 0 : i64, tpu.core_type = #tpu.core_type<tc>, window_params = [{transform_indices = @transform_0, window_bounds = array<i64: 1, 2, 2>}, {transform_indices = @transform_1, window_bounds = array<i64: 1, 8, 8>}, {pipeline_mode = #tpu.pipeline_mode<synchronous>, transform_indices = @transform_2, window_bounds = array<i64: 2, 64>}, {pipeline_mode = #tpu.pipeline_mode<synchronous>, transform_indices = @transform_3, window_bounds = array<i64: 64, 2>}, {pipeline_mode = #tpu.pipeline_mode<synchronous>, transform_indices = @transform_4, window_bounds = array<i64: 8, 64>}, {pipeline_mode = #tpu.pipeline_mode<synchronous>, transform_indices = @transform_5, window_bounds = array<i64: 64, 8>}, {transform_indices = @transform_6, window_bounds = array<i64: 1, 64, 64>}]} {
    %c0 = arith.constant 0 : index
    %c0_0 = arith.constant 0 : index
    %c0_1 = arith.constant 0 : index
    %0 = vector.load %arg1[%c0, %c0_0, %c0_1] : memref<1x2x2xf32, #tpu.memory_space<vmem>>, vector<1x2x2xf32>
    %1 = vector.shape_cast %0 : vector<1x2x2xf32> to vector<2x2xf32>
    %c0_2 = arith.constant 0 : index
    %c0_3 = arith.constant 0 : index
    %2 = vector.load %arg3[%c0_2, %c0_3] : memref<2x64xf32, #tpu.memory_space<vmem>>, vector<2x64xf32>
    %cst = arith.constant dense<0.000000e+00> : vector<2x64xf32>
    %3 = tpu.matmul %1, %2, %cst {dimension_numbers = #tpu.dot_dimension_numbers<[1], [0], [0], [1], [0, 0, 1, 1], [], []>} : vector<2x2xf32>, vector<2x64xf32>, vector<2x64xf32> -> vector<2x64xf32>
    %c0_4 = arith.constant 0 : index
    %c0_5 = arith.constant 0 : index
    %4 = vector.load %arg4[%c0_4, %c0_5] : memref<64x2xf32, #tpu.memory_space<vmem>>, vector<64x2xf32>
    %cst_6 = arith.constant dense<0.000000e+00> : vector<64x64xf32>
    %5 = tpu.matmul %4, %3, %cst_6 {dimension_numbers = #tpu.dot_dimension_numbers<[1], [0], [0], [1], [0, 0, 1, 1], [], []>} : vector<64x2xf32>, vector<2x64xf32>, vector<64x64xf32> -> vector<64x64xf32>
    %c0_7 = arith.constant 0 : index
    %c0_8 = arith.constant 0 : index
    %c0_9 = arith.constant 0 : index
    %6 = vector.load %arg2[%c0_7, %c0_8, %c0_9] : memref<1x8x8xf32, #tpu.memory_space<vmem>>, vector<1x8x8xf32>
    %7 = vector.shape_cast %6 : vector<1x8x8xf32> to vector<8x8xf32>
    %c0_10 = arith.constant 0 : index
    %c0_11 = arith.constant 0 : index
    %8 = vector.load %arg5[%c0_10, %c0_11] : memref<8x64xf32, #tpu.memory_space<vmem>>, vector<8x64xf32>
    %cst_12 = arith.constant dense<0.000000e+00> : vector<8x64xf32>
    %9 = tpu.matmul %7, %8, %cst_12 {dimension_numbers = #tpu.dot_dimension_numbers<[1], [0], [0], [1], [0, 0, 1, 1], [], []>} : vector<8x8xf32>, vector<8x64xf32>, vector<8x64xf32> -> vector<8x64xf32>
    %c0_13 = arith.constant 0 : index
    %c0_14 = arith.constant 0 : index
    %10 = vector.load %arg6[%c0_13, %c0_14] : memref<64x8xf32, #tpu.memory_space<vmem>>, vector<64x8xf32>
    %cst_15 = arith.constant dense<0.000000e+00> : vector<64x64xf32>
    %11 = tpu.matmul %10, %9, %cst_15 {dimension_numbers = #tpu.dot_dimension_numbers<[1], [0], [0], [1], [0, 0, 1, 1], [], []>} : vector<64x8xf32>, vector<8x64xf32>, vector<64x64xf32> -> vector<64x64xf32>
    %12 = arith.addf %5, %11 : vector<64x64xf32>
    %c0_16 = arith.constant 0 : index
    %c0_17 = arith.constant 0 : index
    %c0_18 = arith.constant 0 : index
    %13 = vector.load %arg7[%c0_16, %c0_17, %c0_18] : memref<1x64x64xf32, #tpu.memory_space<vmem>>, vector<1x64x64xf32>
    %14 = vector.shape_cast %13 : vector<1x64x64xf32> to vector<64x64xf32>
    %15 = vector.shape_cast %12 : vector<64x64xf32> to vector<1x64x64xf32>
    tpu.vector_store %arg7[%c0_16, %c0_17, %c0_18], %15 {strides = array<i32>} : memref<1x64x64xf32, #tpu.memory_space<vmem>>, vector<1x64x64xf32>,
    return
  }
  func.func @transform_0(%arg0: i32) -> (i32, i32, i32) {
    %c0_i32 = arith.constant 0 : i32
    %c0_i32_0 = arith.constant 0 : i32
    %c0_i32_1 = arith.constant 0 : i32
    return %arg0, %c0_i32, %c0_i32_0 : i32, i32, i32
  }
  func.func @transform_1(%arg0: i32) -> (i32, i32, i32) {
    %c0_i32 = arith.constant 0 : i32
    %c0_i32_0 = arith.constant 0 : i32
    %c0_i32_1 = arith.constant 0 : i32
    return %arg0, %c0_i32, %c0_i32_0 : i32, i32, i32
  }
  func.func @transform_2(%arg0: i32) -> (i32, i32) {
    %c0_i32 = arith.constant 0 : i32
    %c0_i32_0 = arith.constant 0 : i32
    %c0_i32_1 = arith.constant 0 : i32
    return %c0_i32, %c0_i32_0 : i32, i32
  }
  func.func @transform_3(%arg0: i32) -> (i32, i32) {
    %c0_i32 = arith.constant 0 : i32
    %c0_i32_0 = arith.constant 0 : i32
    %c0_i32_1 = arith.constant 0 : i32
    return %c0_i32, %c0_i32_0 : i32, i32
  }
  func.func @transform_4(%arg0: i32) -> (i32, i32) {
    %c0_i32 = arith.constant 0 : i32
    %c0_i32_0 = arith.constant 0 : i32
    %c0_i32_1 = arith.constant 0 : i32
    return %c0_i32, %c0_i32_0 : i32, i32
  }
  func.func @transform_5(%arg0: i32) -> (i32, i32) {
    %c0_i32 = arith.constant 0 : i32
    %c0_i32_0 = arith.constant 0 : i32
    %c0_i32_1 = arith.constant 0 : i32
    return %c0_i32, %c0_i32_0 : i32, i32
  }
  func.func @transform_6(%arg0: i32) -> (i32, i32, i32) {
    %c0_i32 = arith.constant 0 : i32
    %c0_i32_0 = arith.constant 0 : i32
    %c0_i32_1 = arith.constant 0 : i32
    return %arg0, %c0_i32, %c0_i32_0 : i32, i32, i32
  }
}

</mosaic_0001>

<bundles_post_ra>
// kernel: malignancy_detector_forward.3
= control target key start
LH: loop header
LB: loop body
LE: loop exit
PB: predicated region body
PF: predicated region fallthrough
CT: control target
= control target key end

     0   :  { %12 = vsyncpa [#allocation3], 0  ;;  %s1048_s0 = inlined_call_operand.hbm [shape: f32[6,64,64], index: 0, kind: input, shape index: {}]   ;;  %s1049_s1 = inlined_call_operand.hbm [shape: f32[64,8], index: 1, kind: input, shape index: {}]   ;;  %s1050_s2 = inlined_call_operand.vmem [shape: f32[8,64], index: 2, kind: input, shape index: {}]   ;;  %s1051_s3 = inlined_call_operand.hbm [shape: f32[64,2], index: 3, kind: input, shape index: {}]   ;;  %s1052_s4 = inlined_call_operand.vmem [shape: f32[2,64], index: 4, kind: input, shape index: {}]   ;;  %s1053_s5 = inlined_call_operand.vmem [shape: f32[6,8,8], index: 5, kind: output, shape index: {0}]   ;;  %s1054_s6 = inlined_call_operand.vmem [shape: f32[6,2,2], index: 6, kind: output, shape index: {1}]  }
   0x1   :  { %14 = vsyncpa [#allocation3 + $0x1], 0 }
   0x2   :  { %15 = vsyncpa [#allocation5], 0  ;;  %s896_s21 = smov 0   ;;  %s898_s22 = smov 0  }
   0x3   :  { %s900_s23 = smov 0   ;;  %s902_s24 = smov 0  }
   0x4 LB: > { %s915_s25 = sadd.s32 4294967295, %s855_s24   ;;  %p41_p0 = scmp.ne.s32.totalorder %s847_s22, %s843_s21  ;;  %s855_s24 = sphi %s902_s24, %s1061_s24   ;;  %s851_s23 = sphi %s900_s23, %s1060_s23   ;;  %s847_s22 = sphi %s898_s22, %s1059_s22   ;;  %s843_s21 = sphi %s896_s21, %s1058_s21  }
   0x5   : > { %p42_p1 = scmp.eq.s32.totalorder %s915_s25, 0  ;;  %p615_p2 = scmp.ge.s32.totalorder %s855_s24, 1 }
   0x6   : > { %p188_p3 = scmp.lt.s32.totalorder %s855_s24, 7  ;;  %s199_s29 = sshll.u32 %s1049_s1, 4  ;;  %s200_s29 = int_to_ptr.hbm [resolvable:$true] %s199_s29 }
   0x7   : > { %p923_p4 = por %p42_p1, %p41_p0  ;;  %s857_s7 = smov [#allocation4]  }
   0x8   : > { %p930_p5 = pnand %p615_p2, %p188_p3  ;;  %s201_s8 = sshll.u32 %s857_s7, 4  ;;  %s202_s8 = int_to_ptr.vmem [resolvable:$true] %s201_s8 }
   0x9   : > { %s216_s11 = sshll.u32 %s1051_s3, 4  ;;  %s858_s12 = smov 128   ;;  %s217_s11 = int_to_ptr.hbm [resolvable:$true] %s216_s11 }
   0xa   : > { %p675_p6 = pneg %p930_p5  ;;  %s859_s13 = smov 8  }
   0xb   : > { %s860_s14 = smov [#allocation6]   ;;  %s948_s16 = sadd.s32 1, %s855_s24  }
   0xc   : > { %p676_p7 = pnand %p675_p6, %p42_p1  ;;  %s218_s15 = sshll.u32 %s860_s14, 4  ;;  %s219_s15 = int_to_ptr.vmem [resolvable:$true] %s218_s15 }
   0xd   : > { %s28_s17 = sadd.s32 1, %s851_s23  ;;  %s25_s18 = ssub.s32 %s855_s24, %s948_s16 }
   0xe   : > { %678 = dma.hbm_to_vmem [thread:$0]  (!%p676_p7), %s200_s29, 1024, %s202_s8, [#allocation5], %s858_s12, %s858_s12, %s859_s13  }
   0xf   : > { %681 = dma.hbm_to_vmem [thread:$0]  (!%p676_p7), %s217_s11, 1024, %s219_s15, [#allocation5], %s858_s12, %s858_s12, %s859_s13  }
  0x10   : > { %p35_p8 = scmp.ne.s32.totalorder %s851_s23, %s847_s22  ;;  %p26_p9 = scmp.eq.s32.totalorder %s25_s18, 0 }
  0x11   : > { %p36_p10 = scmp.eq.s32.totalorder %s855_s24, 0  ;;  %s235_s19 = sand.u32 1, %s851_s23  }
  0x12   : > { %s958_s20 = scalar_select %p26_p9, %s851_s23, %s28_s17  }
  0x13   : > { %p37_p11 = por %p36_p10, %p35_p8  ;;  %p688_p12 = scmp.lt.s32.totalorder %s855_s24, 6 }
  0x14   : > { %s619_s21 = sshll.u32 %s235_s19, 6  ;;  %s648_s27 = sshll.u32 %s855_s24, 6 }
  0x15   : > { %s244_s7 = scalar_lea.hbm %s1048_s0, %s648_s27  ;;  %s239_s9 = scalar_lea.vmem [#allocation2], %s619_s21 }
  0x16   : > { %s245_s8 = sshll.u32 %s244_s7, 4  ;;  %s247_s10 = sshll.u32 %s239_s9, 4  ;;  %s246_s8 = int_to_ptr.hbm [resolvable:$true] %s245_s8  ;;  %s248_s10 = int_to_ptr.vmem [resolvable:$true] %s247_s10 }
  0x17   : > { %p965_p13 = pnand %p688_p12, %p37_p11  ;;  %s236_s14 = scalar_lea.sflag [#allocation3], %s235_s19 }
  0x18   : > { %s787_s15 = sshra.s32 %s246_s8, 4  ;;  %s794_s21 = scalar_lea.hbm %s1048_s0, 384  ;;  %s788_s15 = int_to_ptr.hbm [resolvable:$true] %s787_s15 }
  0x19   : > { %s789_s17 = scalar_lea.hbm %s788_s15, 64  ;;  %p791_p2 = pneg %p965_p13 }
  0x1a   : > { %p790_p0 = scmp.ne.s32.totalorder %s788_s15, %s789_s17  ;;  %p795_p7 = scmp.lt.s32.totalorder %s788_s15, %s1048_s0 }
  0x1b   : > { %p796_p8 = scmp.lt.s32.totalorder %s794_s21, %s789_s17 }
  0x1c   : > { %p792_p3 = pnand %p791_p2, %p790_p0 }
  0x1d   : > { %p797_p9 = por %p796_p8, %p795_p7 }
  0x1e   : > { %p793_p6 = pneg %p792_p3 }
  0x20   : > { %p798_p10 = pnand %p797_p9, %p793_p6 }
  0x22   : > { %801 = shalt.err (!%p798_p10)
}
  0x23   : > { %685 = dma.hbm_to_vmem [thread:$0]  (!%p965_p13), %s246_s8, 1024, %s248_s10, %s236_s14, %s858_s12, %s858_s12, %s859_s13  }
  0x24   : > { %259 = sbr.rel (%p930_p5) target bundleno = 368 (0x170), region = 40  ;;  %s261_s19 = sand.u32 (!%p930_p5), 1, %s847_s22  }
  0x25   : > { %s623_s29 = sshll.u32 (!%p930_p5), %s261_s19, 6  ;;  %s262_s7 = scalar_lea.sflag (!%p930_p5), [#allocation3], %s261_s19 }
  0x26   : > { %s985_s9 = scalar_lea.vmem (!%p930_p5), [#allocation2], %s623_s29 }
  0x29   : > { %834 = dma.done.wait (%p923_p4), %s262_s7, 1024  }
  0x2a   : > { %836 = vsyncadd (%p923_p4), %s262_s7, 4294966272 }
  0x2b   : > { %838 = dma.done.wait (%p42_p1), [#allocation5], 2048  }
  0x2c   : > { %840 = vsyncadd (%p42_p1), [#allocation5], 4294965248  ;;  %v331_v0 = vld [vmem:[#allocation4 + $0x38] sm:$0xff]  ;;  %v330_v2 = vld [vmem:[#allocation4 + $0x30] sm:$0xff]  ;;  %vm332_vm0 = vcmask 523264   ;;  %p308_p1 = scmp.lt.s32.totalorder %s915_s25, 5 }
  0x2d   : > { %v431_v1 = vld [vmem:[#allocation6 + $0x38] sm:$0xff]  ;;  %365 = vmatpush.msra.mxu0 %v331_v0  ;;  %649 = vmatpush.msra.mxu1 %v331_v0  ;;  %v430_v3 = vld [vmem:[#allocation6 + $0x30] sm:$0xff]  ;;  %v329_v4 = vld [vmem:[#allocation4 + $0x28] sm:$0xff]  ;;  %vm422_vm1 = vcmask 64512   ;;  %vm497_vm2 = vcmask 9216  }
  0x2e   : > { %440 = vmatpush.msra.mxu2 %v431_v1  ;;  %657 = vmatpush.msra.mxu3 %v431_v1  ;;  %v429_v5 = vld [vmem:[#allocation6 + $0x28] sm:$0xff]  ;;  %v328_v6 = vld [vmem:[#allocation4 + $0x20] sm:$0xff]  ;;  %v327_v8 = vld [vmem:[#allocation4 + $0x18] sm:$0xff]  ;;  %s1063_s25 = smov (!%p308_p1, %s915_s25), 5 }
  0x2f   : > { %366 = vmatpush.msra.mxu0 %v330_v2  ;;  %650 = vmatpush.msra.mxu1 %v330_v2  ;;  %v428_v7 = vld [vmem:[#allocation6 + $0x20] sm:$0xff]  ;;  %v427_v9 = vld [vmem:[#allocation6 + $0x18] sm:$0xff]  ;;  %v326_v10 = vld [vmem:[#allocation4 + $0x10] sm:$0xff]  ;;  %s626_s8 = sshll.u32 %s1063_s25, 3  ;;  %s627_s15 = sshll.u32 %s1063_s25, 1 }
  0x30   : > { %441 = vmatpush.msra.mxu2 %v430_v3  ;;  %658 = vmatpush.msra.mxu3 %v430_v3  ;;  %v426_v11 = vld [vmem:[#allocation6 + $0x10] sm:$0xff]  ;;  %v325_v12 = vld [vmem:[#allocation4 + $0x8] sm:$0xff]  ;;  %v324_v14 = vld [vmem:[#allocation4] sm:$0xff]  ;;  %s311_s14 = scalar_lea.vmem %s1053_s5, %s626_s8  ;;  %s315_s18 = scalar_lea.vmem %s1054_s6, %s627_s15 }
  0x31   : > { %367 = vmatpush.msra.mxu0 %v329_v4  ;;  %651 = vmatpush.msra.mxu1 %v329_v4  ;;  %v425_v13 = vld [vmem:[#allocation6 + $0x8] sm:$0xff]  ;;  %v424_v15 = vld [vmem:[#allocation6] sm:$0xff]  ;;  %v322_v19 = vld [vmem:[%s985_s9 + $0x30] sm:$0xff] }
  0x32   : > { %442 = vmatpush.msra.mxu2 %v429_v5  ;;  %659 = vmatpush.msra.mxu3 %v429_v5  ;;  %v316_v16 = vld [vmem:[%s985_s9] sm:$0xff]  ;;  %v321_v17 = vld [vmem:[%s985_s9 + $0x28] sm:$0xff]  ;;  %v318_v20 = vld [vmem:[%s985_s9 + $0x10] sm:$0xff] }
  0x33   : > { %368 = vmatpush.msra.mxu0 %v328_v6  ;;  %652 = vmatpush.msra.mxu1 %v328_v6  ;;  %v317_v18 = vld [vmem:[%s985_s9 + $0x8] sm:$0xff]  ;;  %v323_v21 = vld [vmem:[%s985_s9 + $0x38] sm:$0xff]  ;;  %v320_v23 = vld [vmem:[%s985_s9 + $0x20] sm:$0xff] }
  0x34   : > { %443 = vmatpush.msra.mxu2 %v428_v7  ;;  %660 = vmatpush.msra.mxu3 %v428_v7  ;;  %v319_v22 = vld [vmem:[%s985_s9 + $0x18] sm:$0xff]  ;;  %v398_v40 = vld [vmem:[%s1050_s2] sm:$0xff] }
  0x35   : > { %369 = vmatpush.msra.mxu0 %v327_v8  ;;  %653 = vmatpush.msra.mxu1 %v327_v8  ;;  %v473_v41 = vld [vmem:[%s1052_s4] sm:$0x3] }
  0x36   : > { %444 = vmatpush.msra.mxu2 %v427_v9  ;;  %661 = vmatpush.msra.mxu3 %v427_v9 }
  0x37   : > { %370 = vmatpush.msra.mxu0 %v326_v10  ;;  %654 = vmatpush.msra.mxu1 %v326_v10 }
  0x38   : > { %445 = vmatpush.msra.mxu2 %v426_v11  ;;  %662 = vmatpush.msra.mxu3 %v426_v11 }
  0x39   : > { %371 = vmatpush.msra.mxu0 %v325_v12  ;;  %655 = vmatpush.msra.mxu1 %v325_v12 }
  0x3a   : > { %446 = vmatpush.msra.mxu2 %v425_v13  ;;  %663 = vmatpush.msra.mxu3 %v425_v13 }
  0x3b   : > { %372 = vmatpush.msra.mxu0 %v324_v14  ;;  %656 = vmatpush.msra.mxu1 %v324_v14 }
  0x3c   : > { %447 = vmatpush.msra.mxu2 %v424_v15  ;;  %664 = vmatpush.msra.mxu3 %v424_v15 }
  0x3d   : > { %628 = vmatmul.msk.f32.vlgmr.msra.gmra.mxu0 %vm332_vm0, %v316_v16  ;;  %633 = vmatmul.msk.f32.vlgmr.msra.gmra.mxu1 %vm332_vm0, %v321_v17 }
  0x3e   : > { %637 = vmatmul.msk.f32.vlgmr.msra.gmra.mxu2 %vm332_vm0, %v316_v16  ;;  %642 = vmatmul.msk.f32.vlgmr.msra.gmra.mxu3 %vm332_vm0, %v321_v17 }
  0x45   : > { %629 = vmatmul.msk.f32.gmra.mxu0 %vm332_vm0, %v317_v18  ;;  %634 = vmatmul.msk.f32.gmra.mxu1 %vm332_vm0, %v322_v19 }
  0x46   : > { %638 = vmatmul.msk.f32.gmra.mxu2 %vm332_vm0, %v317_v18  ;;  %643 = vmatmul.msk.f32.gmra.mxu3 %vm332_vm0, %v322_v19 }
  0x4d   : > { %630 = vmatmul.msk.f32.gmra.mxu0 %vm332_vm0, %v318_v20  ;;  %635 = vmatmul.msk.f32.gmra.mxu1 %vm332_vm0, %v323_v21 }
  0x4e   : > { %639 = vmatmul.msk.f32.gmra.mxu2 %vm332_vm0, %v318_v20  ;;  %644 = vmatmul.msk.f32.gmra.mxu3 %vm332_vm0, %v323_v21 }
  0x55   : > { %631 = vmatmul.msk.f32.gmra.mxu0 %vm332_vm0, %v319_v22 }
  0x56   : > { %640 = vmatmul.msk.f32.gmra.mxu2 %vm332_vm0, %v319_v22 }
  0x5d   : > { %632 = vmatmul.msk.f32.gmra.mxu0 %vm332_vm0, %v320_v23 }
  0x5e   : > { %641 = vmatmul.msk.f32.gmra.mxu2 %vm332_vm0, %v320_v23 }
  0xba   : > { %v374_v24 = vpop.f32.mrf.mxu0  ;;  %v389_v25 = vpop.f32.mrf.mxu1 }
  0xc1   : > { %v449_v26 = vpop.f32.mrf.mxu2  ;;  %v464_v27 = vpop.f32.mrf.mxu3 }
  0xc2   : > { %v377_v28 = vpop.f32.mrf.mxu0  ;;  %v392_v29 = vpop.f32.mrf.mxu1 }
  0xc9   : > { %v452_v30 = vpop.f32.mrf.mxu2  ;;  %v467_v31 = vpop.f32.mrf.mxu3 }
  0xca   : > { %v380_v32 = vpop.f32.mrf.mxu0  ;;  %v395_v33 = vpop.f32.mrf.mxu1 }
  0xcb   : > { %410 = vmatpush.msrb.mxu1 %v395_v33 }
  0xcd   : > { %411 = vmatpush.msrb.mxu1 %v392_v29 }
  0xcf   : > { %412 = vmatpush.msrb.mxu1 %v389_v25 }
  0xd1   : > { %v455_v34 = vpop.f32.mrf.mxu2  ;;  %v470_v35 = vpop.f32.mrf.mxu3 }
  0xd2   : > { %485 = vmatpush.msrb.mxu3 %v470_v35  ;;  %v383_v36 = vpop.f32.mrf.mxu0 }
  0xd4   : > { %486 = vmatpush.msrb.mxu3 %v467_v31 }
  0xd6   : > { %487 = vmatpush.msrb.mxu3 %v464_v27 }
  0xd9   : > { %v458_v37 = vpop.f32.mrf.mxu2 }
  0xda   : > { %v386_v38 = vpop.f32.mrf.mxu0 }
  0xdb   : > { %413 = vmatpush.msrb.mxu1 %v386_v38 }
  0xdd   : > { %414 = vmatpush.msrb.mxu1 %v383_v36 }
  0xdf   : > { %415 = vmatpush.msrb.mxu1 %v380_v32 }
  0xe1   : > { %v461_v39 = vpop.f32.mrf.mxu2  ;;  %416 = vmatpush.msrb.mxu1 %v377_v28 }
  0xe2   : > { %488 = vmatpush.msrb.mxu3 %v461_v39 }
  0xe3   : > { %417 = vmatpush.msrb.mxu1 %v374_v24 }
  0xe4   : > { %489 = vmatpush.msrb.mxu3 %v458_v37  ;;  %636 = vmatmul.msk.f32.vlgmr.msrb.gmra.mxu1 %vm332_vm0, %v398_v40 }
  0xe6   : > { %490 = vmatpush.msrb.mxu3 %v455_v34 }
  0xe8   : > { %491 = vmatpush.msrb.mxu3 %v452_v30 }
  0xea   : > { %492 = vmatpush.msrb.mxu3 %v449_v26 }
  0xeb   : > { %645 = vmatmul.msk.f32.vlgmr.msrb.gmra.mxu3 %vm332_vm0, %v473_v41 }
 0x161   : > { %v419_v42 = vpop.f32.mrf.mxu1 }
 0x162   : > { %423 = vst.msk [vmem:[%s311_s14] sm:$0xff] %vm422_vm1, %v419_v42 }
 0x16e   : > { %v494_v43 = vpop.f32.mrf.mxu3 }
 0x16f   : > { %498 = vst.msk [vmem:[%s315_s18] sm:$0x3] %vm497_vm2, %v494_v43 }
 0x170 PF: > { %p18_p4 = scmp.ge.s32.totalorder %s948_s16, 8   ;;  %s1058_s21 = smov %s847_s22 }
 0x171   : > { %s1059_s22 = smov %s851_s23  ;;  %s1060_s23 = smov %s958_s20 }
 0x172   : > { %s1061_s24 = smov %s948_s16  ;;  %20 = sbr.rel (!%p18_p4) target bundleno = 4 (0x4), region = 100 }
 0x177   :  { %532 = vsyncpa [#allocation3], 1 }
 0x178   :  { %534 = vsyncpa [#allocation3 + $0x1], 1 }
 0x179   :  { %535 = vsyncpa [#allocation5], 1 }

// kernel: malignancy_detector_forward.5
= control target key start
LH: loop header
LB: loop body
LE: loop exit
PB: predicated region body
PF: predicated region fallthrough
CT: control target
= control target key end

     0   :  { %11 = vsyncpa [#allocation3], 0  ;;  %s931_s0 = inlined_call_operand.vmem [shape: f32[4,2,2], index: 0, kind: input, shape index: {}]   ;;  %s932_s1 = inlined_call_operand.vmem [shape: f32[4,8,8], index: 1, kind: input, shape index: {}]   ;;  %s933_s2 = inlined_call_operand.vmem [shape: f32[2,64], index: 2, kind: input, shape index: {}]   ;;  %s934_s3 = inlined_call_operand.vmem [shape: f32[64,2], index: 3, kind: input, shape index: {}]   ;;  %s935_s4 = inlined_call_operand.vmem [shape: f32[8,64], index: 4, kind: input, shape index: {}]   ;;  %s936_s5 = inlined_call_operand.vmem [shape: f32[64,8], index: 5, kind: input, shape index: {}]   ;;  %s937_s6 = inlined_call_operand.hbm [shape: f32[4,64,64], index: 6, kind: output, shape index: {}]  }
   0x1   :  { %13 = vsyncpa [#allocation3 + $0x1], 0  ;;  %s745_s21 = smov 0   ;;  %s747_s22 = smov 0  }
   0x2   :  { %s749_s23 = smov 0   ;;  %s751_s24 = smov 0  }
   0x3 LB: > { %s766_s25 = sadd.s32 4294967295, %s706_s24   ;;  %s568_s26 = sadd.s32 4294967294, %s706_s24   ;;  %s706_s24 = sphi %s751_s24, %s943_s24   ;;  %s702_s23 = sphi %s749_s23, %s942_s23   ;;  %s698_s22 = sphi %s747_s22, %s941_s22   ;;  %s694_s21 = sphi %s745_s21, %s940_s21  }
   0x4   : > { %s770_s27 = sadd.s32 1, %s706_s24   ;;  %s162_s28 = sadd.s32 1, %s702_s23 }
   0x5   : > { %s159_s29 = ssub.s32 %s706_s24, %s770_s27  ;;  %p172_p0 = scmp.ne.s32.totalorder %s702_s23, %s698_s22 }
   0x6   : > { %p160_p1 = scmp.eq.s32.totalorder %s159_s29, 0  ;;  %p173_p2 = scmp.eq.s32.totalorder %s766_s25, 3 }
   0x7   : > { %p178_p3 = scmp.ne.s32.totalorder %s698_s22, %s694_s21  ;;  %p179_p4 = scmp.eq.s32.totalorder %s568_s26, 3 }
   0x8   : > { %s781_s30 = scalar_select %p160_p1, %s702_s23, %s162_s28  }
   0x9   : > { %p783_p5 = por %p173_p2, %p172_p0  ;;  %p787_p6 = por %p179_p4, %p178_p3 }
   0xa   : > { %p571_p7 = scmp.ge.s32.totalorder %s706_s24, 1  ;;  %p223_p8 = scmp.lt.s32.totalorder %s706_s24, 5 }
   0xc   : > { %p224_p9 = pnand %p571_p7, %p223_p8 }
   0xd   : > { %p256_p10 = scmp.lt.s32.totalorder (!%p224_p9), %s766_s25, 3  ;;  %s253_s9 = sand.u32 (!%p224_p9), 1, %s698_s22  }
   0xe   : > { %227 = sbr.rel (%p224_p9) target bundleno = 322 (0x142), region = 44  ;;  %s572_s10 = sshll.u32 (!%p224_p9), %s253_s9, 6 }
   0xf   : > { %s879_s11 = scalar_lea.vmem (!%p224_p9), [#allocation2], %s572_s10  ;;  %s600_s12 = sshll.u32 (!%p224_p9), %s766_s25, 6 }
  0x10   : > { %s491_s16 = sshll.u32 (!%p224_p9), %s879_s11, 4  ;;  %s664_s28 = scalar_lea.hbm (!%p224_p9), %s937_s6, 256  ;;  %s492_s16 = int_to_ptr.vmem [resolvable:$true] %s491_s16 }
  0x13   : > { %v265_v0 = vld [vmem:[%s933_s2] sm:$0x3]  ;;  %vm270_vm0 = vcmask 1041408   ;;  %s257_s13 = scalar_select %p256_p10, %s766_s25, 3  ;;  %vm266_vm1 = vcmask 15360   ;;  %vm304_vm2 = vcmask 64512  }
  0x14   : > { %v303_v1 = vld [vmem:[%s935_s4] sm:$0xff]  ;;  %575 = vmatpush.msk.msra.mxu0 %vm270_vm0, %v265_v0  ;;  %v331_v6 = vld [vmem:[%s936_s5 + $0x18] sm:$0xff]  ;;  %v329_v12 = vld [vmem:[%s936_s5 + $0x8] sm:$0xff]  ;;  %vm469_vm3 = vcmask 523264   ;;  %s479_s25 = scalar_lea.sflag [#allocation3], %s253_s9 }
  0x15   : > { %323 = vmatpush.msra.mxu1 %v303_v1  ;;  %s573_s14 = sshll.u32 %s257_s13, 1  ;;  %s574_s15 = sshll.u32 %s257_s13, 3  ;;  %v297_v7 = vld [vmem:[%s934_s3 + $0x18] sm:$0xff]  ;;  %v328_v8 = vld [vmem:[%s936_s5] sm:$0xff]  ;;  %v295_v13 = vld [vmem:[%s934_s3 + $0x8] sm:$0xff] }
  0x16   : > { %s259_s18 = scalar_lea.vmem %s931_s0, %s573_s14  ;;  %s263_s26 = scalar_lea.vmem %s932_s1, %s574_s15  ;;  %v294_v9 = vld [vmem:[%s934_s3] sm:$0xff]  ;;  %v333_v14 = vld [vmem:[%s936_s5 + $0x28] sm:$0xff]  ;;  %v330_v16 = vld [vmem:[%s936_s5 + $0x10] sm:$0xff] }
  0x17   : > { %v264_v2 = vld [vmem:[%s259_s18] sm:$0x3]  ;;  %v299_v15 = vld [vmem:[%s934_s3 + $0x28] sm:$0xff]  ;;  %v296_v17 = vld [vmem:[%s934_s3 + $0x10] sm:$0xff]  ;;  %s490_s15 = scalar_lea.hbm %s937_s6, %s600_s12 }
  0x18   : > { %v302_v3 = vld [vmem:[%s263_s26] sm:$0xff]  ;;  %576 = vmatmul.msk.f32.vlgmr.msra.gmra.mxu0 %vm266_vm1, %v264_v2  ;;  %v334_v18 = vld [vmem:[%s936_s5 + $0x30] sm:$0xff]  ;;  %v335_v20 = vld [vmem:[%s936_s5 + $0x38] sm:$0xff]  ;;  %s493_s17 = sshll.u32 %s490_s15, 4  ;;  %s494_s17 = int_to_ptr.hbm [resolvable:$true] %s493_s17 }
  0x19   : > { %577 = vmatmul.msk.f32.vlgmr.msra.gmra.mxu1 %vm304_vm2, %v302_v3  ;;  %v332_v10 = vld [vmem:[%s936_s5 + $0x20] sm:$0xff]  ;;  %v300_v19 = vld [vmem:[%s934_s3 + $0x30] sm:$0xff]  ;;  %v301_v21 = vld [vmem:[%s934_s3 + $0x38] sm:$0xff]  ;;  %s658_s18 = sshra.s32 %s494_s17, 4  ;;  %s659_s18 = int_to_ptr.hbm [resolvable:$true] %s658_s18 }
  0x1a   : > { %v298_v11 = vld [vmem:[%s934_s3 + $0x20] sm:$0xff]  ;;  %s660_s19 = scalar_lea.hbm %s659_s18, 64  ;;  %p665_p0 = scmp.lt.s32.totalorder %s659_s18, %s937_s6 }
  0x1b   : > { %p661_p11 = scmp.ne.s32.totalorder %s659_s18, %s660_s19  ;;  %p666_p1 = scmp.lt.s32.totalorder %s664_s28, %s660_s19 }
  0x1d   : > { %p662_p12 = pnand %p661_p11, %p783_p5  ;;  %p667_p2 = por %p666_p1, %p665_p0 }
  0x1f   : > { %p663_p13 = pneg %p662_p12 }
  0x21   : > { %p668_p3 = pnand %p667_p2, %p663_p13 }
  0x95   : > { %v291_v4 = vpop.f32.mrf.mxu0 }
  0x96   : > { %v325_v5 = vpop.f32.mrf.mxu1  ;;  %586 = vmatpush.msk.msrb.mxu1 %vm270_vm0, %v291_v4  ;;  %602 = vmatpush.msk.msra.mxu3 %vm270_vm0, %v291_v4 }
  0x97   : > { %375 = vmatpush.msrb.mxu0 %v325_v5  ;;  %601 = vmatpush.msra.mxu2 %v325_v5 }
  0x98   : > { %581 = vmatmul.msk.f32.vlgmr.msra.gmra.mxu2 %vm304_vm2, %v331_v6  ;;  %590 = vmatmul.msk.f32.vlgmr.msra.gmra.mxu3 %vm266_vm1, %v297_v7 }
  0x99   : > { %578 = vmatmul.msk.f32.vlgmr.msrb.gmra.mxu0 %vm304_vm2, %v328_v8  ;;  %587 = vmatmul.msk.f32.vlgmr.msrb.gmra.mxu1 %vm266_vm1, %v294_v9 }
  0xa0   : > { %582 = vmatmul.msk.f32.gmra.mxu2 %vm304_vm2, %v332_v10  ;;  %591 = vmatmul.msk.f32.gmra.mxu3 %vm266_vm1, %v298_v11 }
  0xa1   : > { %579 = vmatmul.msk.f32.gmra.mxu0 %vm304_vm2, %v329_v12  ;;  %588 = vmatmul.msk.f32.gmra.mxu1 %vm266_vm1, %v295_v13 }
  0xa8   : > { %583 = vmatmul.msk.f32.gmra.mxu2 %vm304_vm2, %v333_v14  ;;  %592 = vmatmul.msk.f32.gmra.mxu3 %vm266_vm1, %v299_v15 }
  0xa9   : > { %580 = vmatmul.msk.f32.gmra.mxu0 %vm304_vm2, %v330_v16  ;;  %589 = vmatmul.msk.f32.gmra.mxu1 %vm266_vm1, %v296_v17 }
  0xb0   : > { %584 = vmatmul.msk.f32.gmra.mxu2 %vm304_vm2, %v334_v18  ;;  %593 = vmatmul.msk.f32.gmra.mxu3 %vm266_vm1, %v300_v19 }
  0xb8   : > { %585 = vmatmul.msk.f32.gmra.mxu2 %vm304_vm2, %v335_v20  ;;  %594 = vmatmul.msk.f32.gmra.mxu3 %vm266_vm1, %v301_v21 }
 0x116   : > { %v377_v22 = vpop.f32.mrf.mxu0  ;;  %v445_v23 = vpop.f32.mrf.mxu1 }
 0x117   : > { %v446_v24 = vadd.f32 %v445_v23, %v377_v22 }
 0x119   : > { %470 = vst.msk [vmem:[%s879_s11] sm:$0xff] %vm469_vm3, %v446_v24 }
 0x11b   : > { %v386_v25 = vpop.f32.mrf.mxu2  ;;  %v454_v26 = vpop.f32.mrf.mxu3 }
 0x11c   : > { %v455_v27 = vadd.f32 %v454_v26, %v386_v25 }
 0x11e   : > { %473 = vst.msk [vmem:[%s879_s11 + $0x18] sm:$0xff] %vm469_vm3, %v455_v27  ;;  %v380_v28 = vpop.f32.mrf.mxu0  ;;  %v448_v29 = vpop.f32.mrf.mxu1 }
 0x11f   : > { %v449_v30 = vadd.f32 %v448_v29, %v380_v28 }
 0x121   : > { %471 = vst.msk [vmem:[%s879_s11 + $0x8] sm:$0xff] %vm469_vm3, %v449_v30 }
 0x123   : > { %v389_v31 = vpop.f32.mrf.mxu2  ;;  %v457_v32 = vpop.f32.mrf.mxu3 }
 0x124   : > { %v458_v33 = vadd.f32 %v457_v32, %v389_v31 }
 0x126   : > { %474 = vst.msk [vmem:[%s879_s11 + $0x20] sm:$0xff] %vm469_vm3, %v458_v33  ;;  %v383_v34 = vpop.f32.mrf.mxu0  ;;  %v451_v35 = vpop.f32.mrf.mxu1 }
 0x127   : > { %v452_v36 = vadd.f32 %v451_v35, %v383_v34 }
 0x129   : > { %472 = vst.msk [vmem:[%s879_s11 + $0x10] sm:$0xff] %vm469_vm3, %v452_v36 }
 0x12b   : > { %v392_v37 = vpop.f32.mrf.mxu2  ;;  %v460_v38 = vpop.f32.mrf.mxu3 }
 0x12c   : > { %v461_v39 = vadd.f32 %v460_v38, %v392_v37 }
 0x12e   : > { %475 = vst.msk [vmem:[%s879_s11 + $0x28] sm:$0xff] %vm469_vm3, %v461_v39 }
 0x133   : > { %v395_v40 = vpop.f32.mrf.mxu2  ;;  %v463_v41 = vpop.f32.mrf.mxu3 }
 0x134   : > { %v464_v42 = vadd.f32 %v463_v41, %v395_v40 }
 0x136   : > { %476 = vst.msk [vmem:[%s879_s11 + $0x30] sm:$0xff] %vm469_vm3, %v464_v42 }
 0x13b   : > { %v398_v43 = vpop.f32.mrf.mxu2  ;;  %v466_v44 = vpop.f32.mrf.mxu3 }
 0x13c   : > { %v467_v45 = vadd.f32 %v466_v44, %v398_v43 }
 0x13e   : > { %477 = vst.msk [vmem:[%s879_s11 + $0x38] sm:$0xff] %vm469_vm3, %v467_v45 }
 0x13f   : > { %671 = shalt.err (!%p668_p3)
}
 0x140   : > { %s708_s9 = smov 128   ;;  %s709_s11 = smov 8  }
 0x141   : > { %603 = dma.vmem_to_hbm [thread:$0]  (%p783_p5), %s492_s16, 1024, %s494_s17, %s479_s25, %s708_s9, %s708_s9, %s709_s11  }
 0x142 PF: > { %p609_p4 = scmp.ge.s32.totalorder %s706_s24, 2  ;;  %s508_s12 = sand.u32 1, %s694_s21  }
 0x143   : > { %s509_s13 = scalar_lea.sflag [#allocation3], %s508_s12 }
 0x144   : > { %p606_p7 = pnand %p609_p4, %p787_p6 }
 0x146   : > { %p607_p8 = pneg %p606_p7 }
 0x148   : > { %689 = dma.done.wait (%p607_p8), %s509_s13, 1024  }
 0x149   : > { %691 = vsyncadd (%p607_p8), %s509_s13, 4294966272  ;;  %p16_p9 = scmp.ge.s32.totalorder %s770_s27, 6   ;;  %s940_s21 = smov %s698_s22 }
 0x14a   : > { %s941_s22 = smov %s702_s23  ;;  %s942_s23 = smov %s781_s30 }
 0x14b   : > { %s943_s24 = smov %s770_s27  ;;  %18 = sbr.rel (!%p16_p9) target bundleno = 3 (0x3), region = 82 }
 0x150   :  { %515 = vsyncpa [#allocation3], 1 }
 0x151   :  { %517 = vsyncpa [#allocation3 + $0x1], 1 }

// kernel: malignancy_detector_forward.4
= control target key start
LH: loop header
LB: loop body
LE: loop exit
PB: predicated region body
PF: predicated region fallthrough
CT: control target
= control target key end

     0   :  { %s1377_s29 = smov 0   ;;  %s1617_s0 = inlined_call_operand.vmem [shape: f32[2,4,3], index: 0, kind: input, shape index: {}]   ;;  %s1618_s1 = inlined_call_operand.vmem [shape: f32[2,64,3], index: 1, kind: input, shape index: {}]   ;;  %s1619_s2 = inlined_call_operand.vmem [shape: bf16[3,192], index: 2, kind: input, shape index: {}]   ;;  %s1620_s3 = inlined_call_operand.vmem [shape: bf16[3,40], index: 3, kind: input, shape index: {}]   ;;  %s1621_s4 = inlined_call_operand.vmem [shape: bf16[192,96], index: 4, kind: input, shape index: {}]   ;;  %s1622_s5 = inlined_call_operand.vmem [shape: f32[1,96], index: 5, kind: input, shape index: {}]   ;;  %s1623_s6 = inlined_call_operand.vmem [shape: bf16[96,128], index: 6, kind: input, shape index: {}]   ;;  %s1624_s7 = inlined_call_operand.vmem [shape: f32[1,128], index: 7, kind: input, shape index: {}]   ;;  %s1625_s8 = inlined_call_operand.vmem [shape: bf16[96,128], index: 8, kind: input, shape index: {}]   ;;  %s1626_s9 = inlined_call_operand.vmem [shape: f32[1,128], index: 9, kind: input, shape index: {}]   ;;  %s1627_s10 = inlined_call_operand.vmem [shape: f32[128,2], index: 10, kind: input, shape index: {}]   ;;  %s1628_s11 = inlined_call_operand.vmem [shape: f32[40,2], index: 11, kind: input, shape index: {}]   ;;  %s1629_s12 = inlined_call_operand.vmem [shape: f32[1,2], index: 12, kind: input, shape index: {}]   ;;  %s1630_s13 = inlined_call_operand.vmem [shape: f32[2,4,2], index: 13, kind: output, shape index: {0}]   ;;  %s1631_s14 = inlined_call_operand.vmem [shape: f32[2,64,2], index: 14, kind: output, shape index: {1}]  }
   0x1 LB: > { %s1125_s30 = sadd.s32 4294967295, %s1298_s29   ;;  %p1129_p0 = scmp.ge.s32.totalorder %s1298_s29, 1  ;;  %s1298_s29 = sphi %s1377_s29, %s25_s29  }
   0x2   : > { %p424_p1 = scmp.lt.s32.totalorder %s1298_s29, 3 }
   0x4   : > { %p425_p2 = pnand %p1129_p0, %p424_p1 }
   0x5   : > { %p478_p3 = scmp.lt.s32.totalorder (!%p425_p2), %s1125_s30, 1 }
   0x6   : > { %428 = sbr.rel (%p425_p2) target bundleno = 726 (0x2d6), region = 72 }
   0xb   : > { %v499_v0 = vld [vmem:[%s1619_s2] sm:$0xf]  ;;  %vm508_vm0 = vcmask 1040384   ;;  %v1262_v1 = vld [vmem:[%s1621_s4 + $0x38] sm:$0xff]  ;;  %s1633_s30 = smov (!%p478_p3, %s1125_s30), 1  ;;  %vm509_vm1 = vcmask 1041408  }
   0xc   : > { %501 = vst [vmem:[#allocation1] ss:$4 sm:$0xff] %v499_v0  ;;  %v1300_v2 = vmov 65535   ;;  %648 = vmatpush.bf16.msra.mxu3 %v1262_v1  ;;  %v1261_v4 = vld [vmem:[%s1621_s4 + $0x30] sm:$0xff]  ;;  %s1130_s21 = sshll.u32 %s1633_s30, 2  ;;  %v1260_v7 = vld [vmem:[%s1621_s4 + $0x28] sm:$0xff] }
   0xd   : > { %v510_v3 = vsel %vm508_vm0, 4294967295, %v1300_v2  ;;  %s481_s24 = scalar_lea.vmem %s1617_s0, %s1130_s21  ;;  %vm504_vm2 = vcmask 23552   ;;  %v1259_v13 = vld [vmem:[%s1621_s4 + $0x20] sm:$0xff]  ;;  %v1258_v14 = vld [vmem:[%s1621_s4 + $0x18] sm:$0xff]  ;;  %v1257_v15 = vld [vmem:[%s1621_s4 + $0x10] sm:$0xff]  ;;  %vm644_vm3 = vcmask 523264   ;;  %s490_s18 = scalar_lea.vmem %s1630_s13, %s1130_s21 }
   0xe   : > { %v1402_v5 = vsel %vm509_vm1, %v510_v3, 0  ;;  %v497_v6 = vld [vmem:[%s481_s24] sm:$0xf]  ;;  %v1256_v16 = vld [vmem:[%s1621_s4 + $0x8] sm:$0xff]  ;;  %v1266_v18 = vld [vmem:[%s1621_s4 + $0x58] sm:$0xff]  ;;  %s1253_s17 = sshll.u32 %s1633_s30, 6 }
   0xf   : > { %v498_v12 = vpack.c.bf16 %v497_v6, %v497_v6  ;;  %v1255_v17 = vld [vmem:[%s1621_s4] sm:$0xff]  ;;  %v1265_v19 = vld [vmem:[%s1621_s4 + $0x50] sm:$0xff]  ;;  %v1264_v20 = vld [vmem:[%s1621_s4 + $0x48] sm:$0xff]  ;;  %s1462_s20 = scalar_lea.vmem %s1618_s1, %s1253_s17  ;;  %vm752_vm4 = vcmask 1043456   ;;  %vm729_vm5 = vcmask 785408   ;;  %vm748_vm6 = vcmask 31744   ;;  %s1584_s25 = scalar_lea.vmem %s1631_s14, %s1253_s17 }
  0x10   : > { %649 = vmatpush.bf16.msra.mxu3 %v1261_v4  ;;  %v1263_v21 = vld [vmem:[%s1621_s4 + $0x40] sm:$0xff]  ;;  %v1272_v28 = vld [vmem:[%s1623_s6 + $0x28] sm:$0xff]  ;;  %v1270_v30 = vld [vmem:[%s1623_s6 + $0x18] sm:$0xff]  ;;  %v1301_v55 = vmov 0.25   ;;  %vm952_vm7 = vcmask 326656   ;;  %vm1018_vm8 = vcmask 15360  }
  0x11   : > { %v1271_v29 = vld [vmem:[%s1623_s6 + $0x20] sm:$0xff]  ;;  %v1269_v31 = vld [vmem:[%s1623_s6 + $0x10] sm:$0xff]  ;;  %v1268_v32 = vld [vmem:[%s1623_s6 + $0x8] sm:$0xff]  ;;  %vm884_vm9 = vcmask 11264  }
  0x12   : > { %v1267_v33 = vld [vmem:[%s1623_s6] sm:$0xff]  ;;  %v887_v38 = vld [vmem:[%s1462_s20 + $0x8] sm:$0xff]  ;;  %v888_v50 = vld [vmem:[%s1462_s20 + $0x10] sm:$0xff] }
  0x13   : > { %v502_v8 = vld.sshfl [vmem:[#allocation1] sm:$0xff pattern:$0x73625140]  ;;  %v503_v9 = vld.sshfl [vmem:[#allocation1 + $0x8] sm:$0xff pattern:$0x73625140] }
  0x14   : > { %v512_v10 = vand.u32 %v1402_v5, %v502_v8  ;;  %v514_v11 = vand.u32 %v1402_v5, %v503_v9  ;;  %650 = vmatpush.bf16.msra.mxu3 %v1260_v7  ;;  %v898_v36 = vld [vmem:[%s1620_s3] sm:$0x3]  ;;  %v1278_v40 = vld [vmem:[%s1625_s8 + $0x28] sm:$0xff]  ;;  %v889_v51 = vld [vmem:[%s1462_s20 + $0x18] sm:$0xff] }
  0x15   : > { %v886_v37 = vld [vmem:[%s1462_s20] sm:$0xff]  ;;  %v912_v39 = vand.u32 %v898_v36, %v1402_v5  ;;  %v895_v52 = vpack.c.bf16 %v889_v51, %v888_v50  ;;  %v891_v54 = vld [vmem:[%s1462_s20 + $0x28] sm:$0xff]  ;;  %v1276_v58 = vld [vmem:[%s1625_s8 + $0x18] sm:$0xff] }
  0x16   : > { %523 = vmatpush.bf16.msra.mxu0 %v512_v10  ;;  %536 = vmatpush.bf16.msra.mxu1 %v514_v11  ;;  %v1289_v41 = vld [vmem:[%s1622_s5] ss:$0 sm:$0xff]  ;;  %v894_v42 = vpack.c.bf16 %v887_v38, %v886_v37  ;;  %v1275_v59 = vld [vmem:[%s1625_s8 + $0x10] sm:$0xff]  ;;  %v1274_v60 = vld [vmem:[%s1625_s8 + $0x8] sm:$0xff] }
  0x17   : > { %v890_v53 = vld [vmem:[%s1462_s20 + $0x20] sm:$0xff]  ;;  %v892_v61 = vld [vmem:[%s1462_s20 + $0x30] sm:$0xff]  ;;  %v893_v62 = vld [vmem:[%s1462_s20 + $0x38] sm:$0xff] }
  0x18   : > { %651 = vmatpush.bf16.msra.mxu3 %v1259_v13  ;;  %v896_v56 = vpack.c.bf16 %v891_v54, %v890_v53  ;;  %v1277_v57 = vld [vmem:[%s1625_s8 + $0x20] sm:$0xff]  ;;  %v897_v63 = vpack.c.bf16 %v893_v62, %v892_v61  ;;  %v946_v2 = vld [vmem:[%s1628_s11 + $0x18] sm:$0xff]  ;;  %v945_v3 = vld [vmem:[%s1628_s11 + $0x10] sm:$0xff] }
  0x19   : > { %1136 = vmatmul.msk.bf16.vlgmr.msra.gmra.mxu0 %vm504_vm2, %v498_v12  ;;  %1137 = vmatmul.msk.bf16.vlgmr.msra.gmra.mxu1 %vm504_vm2, %v498_v12  ;;  %v1273_v0 = vld [vmem:[%s1625_s8] sm:$0xff]  ;;  %v944_v5 = vld [vmem:[%s1628_s11 + $0x8] sm:$0xff]  ;;  %v863_v9 = vld [vmem:[%s1627_s10 + $0x78] sm:$0xff] }
  0x1a   : > { %735 = vmatpush.bf16.msrb.mxu1 %v1272_v28  ;;  %921 = vmatpush.bf16.msrb.mxu0 %v912_v39  ;;  %v947_v1 = vld [vmem:[%s1628_s11 + $0x20] sm:$0xff]  ;;  %v862_v10 = vld [vmem:[%s1627_s10 + $0x70] sm:$0xff]  ;;  %v861_v12 = vld [vmem:[%s1627_s10 + $0x68] sm:$0xff] }
  0x1b   : > { %988 = vmatpush.msra.mxu2 %v947_v1  ;;  %v943_v6 = vld [vmem:[%s1628_s11] sm:$0xff]  ;;  %v853_v28 = vld [vmem:[%s1627_s10 + $0x28] sm:$0xff] }
  0x1c   : > { %652 = vmatpush.bf16.msra.mxu3 %v1258_v14  ;;  %v860_v14 = vld [vmem:[%s1627_s10 + $0x60] sm:$0xff] }
  0x1d   : > { %989 = vmatpush.msra.mxu2 %v946_v2  ;;  %v789_v39 = vld [vmem:[%s1626_s9] sm:$0x1] }
  0x1e   : > { %736 = vmatpush.bf16.msrb.mxu1 %v1271_v29  ;;  %v852_v29 = vld [vmem:[%s1627_s10 + $0x20] sm:$0xff] }
  0x1f   : > { %990 = vmatpush.msra.mxu2 %v945_v3 }
  0x20   : > { %653 = vmatpush.bf16.msra.mxu3 %v1257_v15 }
  0x21   : > { %991 = vmatpush.msra.mxu2 %v944_v5 }
  0x22   : > { %737 = vmatpush.bf16.msrb.mxu1 %v1270_v30  ;;  %v851_v30 = vld [vmem:[%s1627_s10 + $0x18] sm:$0xff] }
  0x23   : > { %992 = vmatpush.msra.mxu2 %v943_v6 }
  0x24   : > { %654 = vmatpush.bf16.msra.mxu3 %v1256_v16 }
  0x26   : > { %738 = vmatpush.bf16.msrb.mxu1 %v1269_v31  ;;  %v850_v31 = vld [vmem:[%s1627_s10 + $0x10] sm:$0xff] }
  0x28   : > { %655 = vmatpush.bf16.msra.mxu3 %v1255_v17 }
  0x29   : > { %1239 = vmatmul.msk.bf16.vlgmr.msrb.gmra.mxu0 %vm504_vm2, %v894_v42 }
  0x2a   : > { %739 = vmatpush.bf16.msrb.mxu1 %v1268_v32  ;;  %v849_v32 = vld [vmem:[%s1627_s10 + $0x8] sm:$0xff] }
  0x2c   : > { %665 = vmatpush.bf16.msrb.mxu3 %v1266_v18 }
  0x2e   : > { %740 = vmatpush.bf16.msrb.mxu1 %v1267_v33  ;;  %v848_v33 = vld [vmem:[%s1627_s10] sm:$0xff] }
  0x30   : > { %666 = vmatpush.bf16.msrb.mxu3 %v1265_v19 }
  0x34   : > { %667 = vmatpush.bf16.msrb.mxu3 %v1264_v20  ;;  %v859_v20 = vld [vmem:[%s1627_s10 + $0x58] sm:$0xff] }
  0x38   : > { %668 = vmatpush.bf16.msrb.mxu3 %v1263_v21  ;;  %v858_v21 = vld [vmem:[%s1627_s10 + $0x50] sm:$0xff] }
  0x39   : > { %1240 = vmatmul.msk.bf16.gmra.mxu0 %vm504_vm2, %v895_v52 }
  0x49   : > { %1241 = vmatmul.msk.bf16.gmra.mxu0 %vm504_vm2, %v896_v56 }
  0x59   : > { %1242 = vmatmul.msk.bf16.gmra.mxu0 %vm504_vm2, %v897_v63 }
  0x96   : > { %v525_v22 = vpop.f32.mrf.mxu0  ;;  %v538_v23 = vpop.f32.mrf.mxu1 }
  0x97   : > { %v542_v24 = vpack.c.bf16 %v525_v22, %v525_v22  ;;  %v543_v27 = vpack.c.bf16 %v538_v23, %v538_v23  ;;  %v857_v22 = vld [vmem:[%s1627_s10 + $0x48] sm:$0xff]  ;;  %v856_v23 = vld [vmem:[%s1627_s10 + $0x40] sm:$0xff] }
  0x99   : > { %656 = vmatmul.bf16.vlgmr.msra.gmra.mxu3 %v542_v24 }
  0x9a   : > { %831 = vmatpush.bf16.msra.mxu3 %v1278_v40  ;;  %v1290_v40 = vld [vmem:[%s1624_s7] ss:$0 sm:$0xff] }
  0x9e   : > { %v527_v25 = vpop.f32.mrf.mxu0  ;;  %v540_v26 = vpop.f32.mrf.mxu1  ;;  %832 = vmatpush.bf16.msra.mxu3 %v1277_v57 }
  0x9f   : > { %v855_v26 = vld [vmem:[%s1627_s10 + $0x38] sm:$0xff] }
  0xa2   : > { %833 = vmatpush.bf16.msra.mxu3 %v1276_v58 }
  0xa6   : > { %834 = vmatpush.bf16.msra.mxu3 %v1275_v59  ;;  %v923_v4 = vpop.f32.mrf.mxu0 }
  0xa7   : > { %1243 = vmatmul.msk.f32.vlgmr.msra.gmra.mxu2 %vm952_vm7, %v923_v4 }
  0xa9   : > { %1186 = vmatmul.msk.bf16.vlgmr.msrb.gmra.mxu3 %vm644_vm3, %v543_v27  ;;  %v854_v27 = vld [vmem:[%s1627_s10 + $0x30] sm:$0xff] }
  0xaa   : > { %835 = vmatpush.bf16.msra.mxu3 %v1274_v60 }
  0xae   : > { %836 = vmatpush.bf16.msra.mxu3 %v1273_v0  ;;  %v925_v7 = vpop.f32.mrf.mxu0 }
  0xaf   : > { %1244 = vmatmul.msk.f32.gmra.mxu2 %vm952_vm7, %v925_v7 }
  0xb6   : > { %v928_v11 = vpop.f32.mrf.mxu0 }
  0xb7   : > { %1245 = vmatmul.msk.f32.gmra.mxu2 %vm952_vm7, %v928_v11 }
  0xbe   : > { %v930_v15 = vpop.f32.mrf.mxu0 }
  0xbf   : > { %1246 = vmatmul.msk.f32.gmra.mxu2 %vm952_vm7, %v930_v15 }
  0xc6   : > { %v933_v18 = vpop.f32.mrf.mxu0 }
  0xc7   : > { %1247 = vmatmul.msk.f32.gmra.mxu2 %vm952_vm7, %v933_v18 }
  0xce   : > { %v935_v19 = vpop.f32.mrf.mxu0 }
  0xcf   : > { %1248 = vmatmul.msk.f32.gmra.mxu2 %vm952_vm7, %v935_v19 }
  0xd6   : > { %v938_v24 = vpop.f32.mrf.mxu0 }
  0xd7   : > { %1249 = vmatmul.msk.f32.gmra.mxu2 %vm952_vm7, %v938_v24 }
  0xde   : > { %v940_v25 = vpop.f32.mrf.mxu0 }
  0xdf   : > { %1250 = vmatmul.msk.f32.gmra.mxu2 %vm952_vm7, %v940_v25 }
 0x11c   : > { %v657_v34 = vpop.f32.mrf.mxu3 }
 0x11d   : > { %v658_v43 = vadd.f32 %v1289_v41, %v657_v34  ;;  %v1291_v34 = vld [vmem:[%s1629_s12] ss:$0 sm:$0xff] }
 0x124   : > { %v659_v35 = vpop.f32.mrf.mxu3 }
 0x12a   : > { %v994_v35 = vpop.f32.mrf.mxu2 }
 0x12b   : > { %v995_v36 = vadd.f32 %v1291_v34, %v994_v35 }
 0x12c   : > { %v670_v44 = vpop.f32.mrf.mxu3 }
 0x12d   : > { %v671_v45 = vadd.f32 %v670_v44, %v658_v43  ;;  %1019 = vst.msk [vmem:[%s1584_s25] sm:$0xff] %vm1018_vm8, %v995_v36 }
 0x12f   : > { %v674_v46 = vmax.f32 %v671_v45, 0.0 }
 0x131   : > { %v675_v47 = vmin.f32 %v674_v46, 6.0 }
 0x132   : > { %v997_v37 = vpop.f32.mrf.mxu2 }
 0x133   : > { %v676_v48 = vpack.c.bf16 %v675_v47, %v675_v47  ;;  %1212 = vmatpush.msk.msra.mxu1 %vm752_vm4, %v675_v47  ;;  %v998_v38 = vadd.f32 %v1291_v34, %v997_v37 }
 0x134   : > { %v672_v49 = vpop.f32.mrf.mxu3 }
 0x135   : > { %1211 = vmatmul.msk.bf16.vlgmr.msrb.gmra.mxu1 %vm729_vm5, %v676_v48  ;;  %1020 = vst.msk [vmem:[%s1584_s25 + $0x8] sm:$0xff] %vm1018_vm8, %v998_v38 }
 0x136   : > { %864 = vmatpush.msrb.mxu1 %v863_v9 }
 0x138   : > { %865 = vmatpush.msrb.mxu1 %v862_v10 }
 0x13a   : > { %866 = vmatpush.msrb.mxu1 %v861_v12  ;;  %v1000_v41 = vpop.f32.mrf.mxu2 }
 0x13b   : > { %v1001_v43 = vadd.f32 %v1291_v34, %v1000_v41 }
 0x13c   : > { %867 = vmatpush.msrb.mxu1 %v860_v14 }
 0x13d   : > { %1021 = vst.msk [vmem:[%s1584_s25 + $0x10] sm:$0xff] %vm1018_vm8, %v1001_v43 }
 0x13e   : > { %868 = vmatpush.msrb.mxu1 %v859_v20 }
 0x140   : > { %869 = vmatpush.msrb.mxu1 %v858_v21 }
 0x142   : > { %870 = vmatpush.msrb.mxu1 %v857_v22  ;;  %v1003_v50 = vpop.f32.mrf.mxu2 }
 0x143   : > { %v1004_v52 = vadd.f32 %v1291_v34, %v1003_v50 }
 0x144   : > { %871 = vmatpush.msrb.mxu1 %v856_v23 }
 0x145   : > { %1213 = vmatmul.msk.f32.vlgmr.msra.gmra.mxu1 %vm748_vm6, %v1301_v55  ;;  %1022 = vst.msk [vmem:[%s1584_s25 + $0x18] sm:$0xff] %vm1018_vm8, %v1004_v52 }
 0x146   : > { %872 = vmatpush.msrb.mxu1 %v855_v26 }
 0x148   : > { %873 = vmatpush.msrb.mxu1 %v854_v27 }
 0x14a   : > { %874 = vmatpush.msrb.mxu1 %v853_v28  ;;  %v1006_v57 = vpop.f32.mrf.mxu2 }
 0x14b   : > { %v1007_v58 = vadd.f32 %v1291_v34, %v1006_v57 }
 0x14c   : > { %875 = vmatpush.msrb.mxu1 %v852_v29 }
 0x14d   : > { %1023 = vst.msk [vmem:[%s1584_s25 + $0x20] sm:$0xff] %vm1018_vm8, %v1007_v58 }
 0x14e   : > { %876 = vmatpush.msrb.mxu1 %v851_v30 }
 0x150   : > { %877 = vmatpush.msrb.mxu1 %v850_v31 }
 0x152   : > { %878 = vmatpush.msrb.mxu1 %v849_v32  ;;  %v1009_v59 = vpop.f32.mrf.mxu2 }
 0x153   : > { %v1010_v60 = vadd.f32 %v1291_v34, %v1009_v59 }
 0x154   : > { %879 = vmatpush.msrb.mxu1 %v848_v33 }
 0x155   : > { %1024 = vst.msk [vmem:[%s1584_s25 + $0x28] sm:$0xff] %vm1018_vm8, %v1010_v60 }
 0x15a   : > { %v1012_v61 = vpop.f32.mrf.mxu2 }
 0x15b   : > { %v1013_v62 = vadd.f32 %v1291_v34, %v1012_v61 }
 0x15d   : > { %1025 = vst.msk [vmem:[%s1584_s25 + $0x30] sm:$0xff] %vm1018_vm8, %v1013_v62 }
 0x162   : > { %v1015_v63 = vpop.f32.mrf.mxu2 }
 0x163   : > { %v1016_v0 = vadd.f32 %v1291_v34, %v1015_v63 }
 0x165   : > { %1026 = vst.msk [vmem:[%s1584_s25 + $0x38] sm:$0xff] %vm1018_vm8, %v1016_v0 }
 0x1b2   : > { %v1518_v8 = vpop.f32.mrf.mxu1 }
 0x1b3   : > { %v743_v45 = vadd.f32 %v1290_v40, %v1518_v8 }
 0x1b5   : > { %v746_v48 = vmax.f32 %v743_v45, 0.0 }
 0x1b7   : > { %v747_v54 = vmin.f32 %v746_v48, 6.0 }
 0x1ba   : > { %v744_v13 = vpop.f32.mrf.mxu1 }
 0x1c2   : > { %v773_v16 = vpop.f32.mrf.mxu1 }
 0x1c3   : > { %v776_v17 = vpack.c.bf16 %v773_v16, %v773_v16 }
 0x1c5   : > { %1238 = vmatmul.msk.bf16.vlgmr.msra.gmra.mxu3 %vm729_vm5, %v776_v17 }
 0x248   : > { %v838_v42 = vpop.f32.mrf.mxu3 }
 0x249   : > { %v839_v44 = vadd.f32 %v838_v42, %v789_v39 }
 0x24b   : > { %v842_v46 = vadd.f32 3.0, %v839_v44 }
 0x24d   : > { %v843_v47 = vmax.f32 %v842_v46, 0.0 }
 0x24f   : > { %v844_v49 = vmin.f32 %v843_v47, 6.0 }
 0x250   : > { %v840_v51 = vpop.f32.mrf.mxu3 }
 0x251   : > { %v845_v53 = vmul.f32 0.16666667, %v844_v49 }
 0x253   : > { %v846_v55 = vperm.slane %v845_v53, 0 }
 0x255   : > { %v847_v56 = vmul.f32 %v846_v55, %v747_v54 }
 0x257   : > { %880 = vmatmul.f32.vlgmr.msrb.gmra.mxu1 %v847_v56 }
 0x2d4   : > { %v881_v1 = vpop.f32.mrf.mxu1 }
 0x2d5   : > { %885 = vst.msk [vmem:[%s490_s18] sm:$0xf] %vm884_vm9, %v881_v1 }
 0x2d6 PF: > { %s25_s29 = sadd.s32 1, %s1298_s29  }
 0x2d7   : > { %p22_p4 = scmp.ge.s32.totalorder %s25_s29, 4  }
 0x2d9   :  { %24 = sbr.rel (!%p22_p4) target bundleno = 1 (0x1), region = 117 }

</bundles_post_ra>
